<compile_context>
chip_gen: v6e
topology: v6e:2x2x1
jax: 0.10.0
libtpu: 0.0.40
codegen_flags: <defaults>
</compile_context>

<pallas_src>
import functools

import numpy as np

import jax
import jax.numpy as jnp
from jax.experimental import pallas as pl
from jax.experimental.pallas import tpu as pltpu


def _round_up(x, m):
    return ((x + m - 1) // m) * m


# ----------------------------- Pallas kernel --------------------------------
def _alpha_cnn_kernel(conv_w_ref, conv_b_ref, xpad_ref, wfused_ref, fcb_ref,
                      out_ref, act_ref, *, C, K, Lpad):
    """Fused conv1d + ReLU + (pool@fc) for one batch tile.

    conv_w_ref : SMEM (C, K)            conv weights (in_channels == 1 squeezed)
    conv_b_ref : SMEM (C,)              conv bias
    xpad_ref   : VMEM (TB, Lpad+K-1)    zero-padded input tile (f32)
    wfused_ref : VMEM (C*Lpad, O)       pool @ fc weight, bf16, zero pad rows
    fcb_ref    : VMEM (1, O)            fc bias (f32)
    out_ref    : VMEM (TB, O)           f32
    act_ref    : VMEM (TB, C*Lpad)      scratch: bf16 ReLU activations
    """
    xpad = xpad_ref[...]                                   # (TB, Lpad+K-1)

    # Hoist the K shifted views once; reuse them for all C channels.  Each view
    # is a full Lpad-wide (lane-dense) slab; lanes >= L see only the trailing
    # zero padding, so they produce finite ReLU(bias)-ish values that hit zero
    # rows of wfused below.
    shifts = [xpad[:, k:k + Lpad] for k in range(K)]       # K x (TB, Lpad)

    for c in range(C):                                     # 8 channels, unrolled
        # Conv1d (cross-correlation) for channel c, seeded with the first tap.
        acc = conv_w_ref[c, 0] * shifts[0]
        for k in range(1, K):
            acc = acc + conv_w_ref[c, k] * shifts[k]
        # ReLU, stored as a full lane-aligned (TB, Lpad) bf16 slab (unmasked).
        act_ref[:, c * Lpad:(c + 1) * Lpad] = jnp.maximum(
            acc + conv_b_ref[c], 0.0).astype(act_ref.dtype)

    # Single bf16 MXU matmul with f32 accumulation:
    #   (TB, C*Lpad) @ (C*Lpad, O)   (pool + FC fused into the weight).
    out_ref[...] = (jnp.dot(act_ref[...], wfused_ref[...],
                            preferred_element_type=jnp.float32)
                    + fcb_ref[...])


# ------------------------------ glue / wrapper -------------------------------
def _adaptive_avg_pool_matrix(L, R):
    """(L, R) matrix implementing torch.nn.AdaptiveAvgPool1d(R) on length L."""
    P = np.zeros((L, R), np.float32)
    for r in range(R):
        start = (r * L) // R
        end = -((-(r + 1) * L) // R)             # ceil((r+1)*L / R)
        P[start:end, r] = 1.0 / (end - start)
    return jnp.asarray(P)


def alpha_cnn_forward(x, conv_w, conv_b, fc_w, fc_b, reduced_size, *,
                      tile_b=None):
    B, L = x.shape
    C, _, K = conv_w.shape                        # (8, 1, 5)
    O = fc_w.shape[0]
    R = reduced_size
    pad = (K - 1) // 2
    Lpad = _round_up(L, 128)                      # per-channel lane-aligned stride
    Lxp = Lpad + K - 1                            # padded input width (260)

    if tile_b is None:
        # MXU-M-aligned tile for large batches (fills v6e/v7x 256-row MXU and
        # gives >=2 grid tiles for megacore at realistic B); small batches just
        # round up to a sublane multiple so the demo doesn't pad 4 -> 256.
        tile_b = min(256, max(8, _round_up(B, 8)))
    assert tile_b % 8 == 0

    # Pad batch to a multiple of the tile; extra rows are sliced off at the end.
    # Right-pad the length all the way to Lpad + K - 1 so the kernel can write
    # full Lpad-wide slabs with no masked stores and no scratch zeroing.
    Bp = _round_up(B, tile_b)
    xpad = jnp.pad(x.astype(jnp.float32),
                   ((0, Bp - B), (pad, Lxp - L - pad)))

    # Fuse AdaptiveAvgPool1d and the FC layer in the wrapper (both linear):
    #   W_fused[c*Lpad + l, o] = sum_r pool[l, r] * fc_w[o, c*R + r]
    # Built at HIGHEST precision in f32, then cast to bf16 for the MXU.
    pool = _adaptive_avg_pool_matrix(L, R)                                # (L, R)
    fcw_r = fc_w.reshape(O, C, R).transpose(1, 2, 0).astype(jnp.float32)  # (C,R,O)
    fused = jnp.einsum('lr,cro->clo', pool, fcw_r,
                       precision=jax.lax.Precision.HIGHEST)               # (C,L,O)
    wfused = jnp.zeros((C, Lpad, O), jnp.float32).at[:, :L, :].set(fused)
    wfused = wfused.reshape(C * Lpad, O).astype(jnp.bfloat16)
    fcb_r = fc_b.reshape(1, O).astype(jnp.float32)
    cw = conv_w.reshape(C, K).astype(jnp.float32)
    cb = conv_b.reshape(C).astype(jnp.float32)

    kernel = functools.partial(_alpha_cnn_kernel, C=C, K=K, Lpad=Lpad)

    flops = 2 * Bp * C * Lpad * K + Bp * C * Lpad + 2 * Bp * (C * Lpad) * O
    bytes_accessed = (4 * (Bp * Lxp + Bp * O + C * K + C + O)
                      + 2 * C * Lpad * O)

    out = pl.pallas_call(
        kernel,
        out_shape=jax.ShapeDtypeStruct((Bp, O), jnp.float32),
        grid=(Bp // tile_b,),
        in_specs=[
            pl.BlockSpec(memory_space=pltpu.MemorySpace.SMEM),     # conv_w (C,K)
            pl.BlockSpec(memory_space=pltpu.MemorySpace.SMEM),     # conv_b (C,)
            pl.BlockSpec((tile_b, Lxp), lambda i: (i, 0)),         # xpad batch tile
            pl.BlockSpec((C * Lpad, O), lambda i: (0, 0)),         # fused pool@fc W
            pl.BlockSpec((1, O), lambda i: (0, 0)),                # fc bias
        ],
        out_specs=pl.BlockSpec((tile_b, O), lambda i: (i, 0)),
        scratch_shapes=[pltpu.VMEM((tile_b, C * Lpad), jnp.bfloat16)],
        compiler_params=pltpu.CompilerParams(
            dimension_semantics=("parallel",)),
        cost_estimate=pl.CostEstimate(flops=flops, transcendentals=0,
                                      bytes_accessed=bytes_accessed),
    )(cw, cb, xpad, wfused, fcb_r)
    return out[:B]


# ----------------------------- pure-JAX reference ----------------------------
def alpha_cnn_reference(x, conv_w, conv_b, fc_w, fc_b, reduced_size):
    B, L = x.shape
    C, _, K = conv_w.shape
    pad = (K - 1) // 2
    xpad = jnp.pad(x, ((0, 0), (pad, pad)))
    conv = jnp.stack(
        [sum(conv_w[c, 0, k] * xpad[:, k:k + L] for k in range(K)) + conv_b[c]
         for c in range(C)], axis=1)                                  # (B, C, L)
    act = jnp.maximum(conv, 0.0)
    P = _adaptive_avg_pool_matrix(L, reduced_size)
    pooled = jnp.einsum('bcl,lr->bcr', act, P,
                        precision=jax.lax.Precision.HIGHEST)          # (B, C, R)
    flat = pooled.reshape(B, -1)
    return jnp.dot(flat, fc_w.T, precision=jax.lax.Precision.HIGHEST) + fc_b


# ------------------------------------ main ------------------------------------
if __name__ == "__main__":
    input_length = 200                              # L
    output_size = 3
    # TODO(synk): original module uses `L // 20` with an undefined global `L`;
    # interpreted here as input_length // 20 (confirm with model owner).
    reduced_size = max(10, input_length // 20)      # 10
    batch = 4

    key = jax.random.PRNGKey(0)
    k1, k2, k3, k4, k5 = jax.random.split(key, 5)
    conv_w = 0.3 * jax.random.normal(k1, (8, 1, 5), dtype=jnp.float32)
    conv_b = 0.1 * jax.random.normal(k2, (8,), dtype=jnp.float32)
    fc_w = 0.1 * jax.random.normal(k3, (output_size, 8 * reduced_size),
                                   dtype=jnp.float32)
    fc_b = 0.1 * jax.random.normal(k4, (output_size,), dtype=jnp.float32)
    x = jax.random.normal(k5, (batch, input_length), dtype=jnp.float32)

    out = alpha_cnn_forward(x, conv_w, conv_b, fc_w, fc_b, reduced_size)
    out = jax.block_until_ready(out)

    ref = alpha_cnn_reference(x, conv_w, conv_b, fc_w, fc_b, reduced_size)
    # Tolerance sized for the explicit bf16 activations/weights in the single
    # MXU contraction (f32 accumulation); conv/ReLU and the wrapper-side
    # pool@fc fusion are exact f32.
    np.testing.assert_allclose(np.asarray(out), np.asarray(ref),
                               rtol=5e-3, atol=5e-3)
    print("KERNEL_OK")
</pallas_src>

<mosaic_0001>
module attributes {stable_mosaic.version = 11 : i64} {
  func.func @_alpha_cnn_kernel(%arg0: i32, %arg1: memref<8x5xf32, #tpu.memory_space<smem>>, %arg2: memref<8xf32, #tpu.memory_space<smem>>, %arg3: memref<8x260xf32, #tpu.memory_space<vmem>>, %arg4: memref<2048x3xbf16, #tpu.memory_space<vmem>>, %arg5: memref<1x3xf32, #tpu.memory_space<vmem>>, %arg6: memref<8x3xf32, #tpu.memory_space<vmem>>, %arg7: memref<8x2048xbf16, #tpu.memory_space<vmem>>) attributes {dimension_semantics = [#tpu.dimension_semantics<parallel>], iteration_bounds = array<i64: 1>, scalar_prefetch = 0 : i64, scratch_operands = 1 : i64, tpu.core_type = #tpu.core_type<tc>, window_params = [{transform_indices = @transform_0, window_bounds = array<i64: 8, 5>}, {transform_indices = @transform_1, window_bounds = array<i64: 8>}, {transform_indices = @transform_2, window_bounds = array<i64: 8, 260>}, {pipeline_mode = #tpu.pipeline_mode<synchronous>, transform_indices = @transform_3, window_bounds = array<i64: 2048, 3>}, {pipeline_mode = #tpu.pipeline_mode<synchronous>, transform_indices = @transform_4, window_bounds = array<i64: 1, 3>}, {transform_indices = @transform_5, window_bounds = array<i64: 8, 3>}]} {
    %c0 = arith.constant 0 : index
    %c0_0 = arith.constant 0 : index
    %0 = vector.load %arg3[%c0, %c0_0] : memref<8x260xf32, #tpu.memory_space<vmem>>, vector<8x260xf32>
    %1 = vector.extract_strided_slice %0 {offsets = [0, 0], sizes = [8, 256], strides = [1, 1]} : vector<8x260xf32> to vector<8x256xf32>
    %2 = vector.extract_strided_slice %0 {offsets = [0, 1], sizes = [8, 256], strides = [1, 1]} : vector<8x260xf32> to vector<8x256xf32>
    %3 = vector.extract_strided_slice %0 {offsets = [0, 2], sizes = [8, 256], strides = [1, 1]} : vector<8x260xf32> to vector<8x256xf32>
    %4 = vector.extract_strided_slice %0 {offsets = [0, 3], sizes = [8, 256], strides = [1, 1]} : vector<8x260xf32> to vector<8x256xf32>
    %5 = vector.extract_strided_slice %0 {offsets = [0, 4], sizes = [8, 256], strides = [1, 1]} : vector<8x260xf32> to vector<8x256xf32>
    %c0_1 = arith.constant 0 : index
    %c0_2 = arith.constant 0 : index
    %6 = memref.load %arg1[%c0_1, %c0_2] : memref<8x5xf32, #tpu.memory_space<smem>>
    %7 = vector.broadcast %6 : f32 to vector<8x256xf32>
    %8 = arith.mulf %7, %1 : vector<8x256xf32>
    %c0_3 = arith.constant 0 : index
    %c1 = arith.constant 1 : index
    %9 = memref.load %arg1[%c0_3, %c1] : memref<8x5xf32, #tpu.memory_space<smem>>
    %10 = vector.broadcast %9 : f32 to vector<8x256xf32>
    %11 = arith.mulf %10, %2 : vector<8x256xf32>
    %12 = arith.addf %8, %11 : vector<8x256xf32>
    %c0_4 = arith.constant 0 : index
    %c2 = arith.constant 2 : index
    %13 = memref.load %arg1[%c0_4, %c2] : memref<8x5xf32, #tpu.memory_space<smem>>
    %14 = vector.broadcast %13 : f32 to vector<8x256xf32>
    %15 = arith.mulf %14, %3 : vector<8x256xf32>
    %16 = arith.addf %12, %15 : vector<8x256xf32>
    %c0_5 = arith.constant 0 : index
    %c3 = arith.constant 3 : index
    %17 = memref.load %arg1[%c0_5, %c3] : memref<8x5xf32, #tpu.memory_space<smem>>
    %18 = vector.broadcast %17 : f32 to vector<8x256xf32>
    %19 = arith.mulf %18, %4 : vector<8x256xf32>
    %20 = arith.addf %16, %19 : vector<8x256xf32>
    %c0_6 = arith.constant 0 : index
    %c4 = arith.constant 4 : index
    %21 = memref.load %arg1[%c0_6, %c4] : memref<8x5xf32, #tpu.memory_space<smem>>
    %22 = vector.broadcast %21 : f32 to vector<8x256xf32>
    %23 = arith.mulf %22, %5 : vector<8x256xf32>
    %24 = arith.addf %20, %23 : vector<8x256xf32>
    %c0_7 = arith.constant 0 : index
    %25 = memref.load %arg2[%c0_7] : memref<8xf32, #tpu.memory_space<smem>>
    %26 = vector.broadcast %25 : f32 to vector<8x256xf32>
    %27 = arith.addf %24, %26 : vector<8x256xf32>
    %cst = arith.constant 0.000000e+00 : f32
    %28 = vector.broadcast %cst : f32 to vector<8x256xf32>
    %29 = arith.maximumf %27, %28 : vector<8x256xf32>
    %30 = arith.truncf %29 : vector<8x256xf32> to vector<8x256xbf16>
    %c0_8 = arith.constant 0 : index
    %c0_9 = arith.constant 0 : index
    %31 = vector.load %arg7[%c0_8, %c0_9] : memref<8x2048xbf16, #tpu.memory_space<vmem>>, vector<8x256xbf16>
    tpu.vector_store %arg7[%c0_8, %c0_9], %30 {strides = array<i32>} : memref<8x2048xbf16, #tpu.memory_space<vmem>>, vector<8x256xbf16>,
    %c1_10 = arith.constant 1 : index
    %c0_11 = arith.constant 0 : index
    %32 = memref.load %arg1[%c1_10, %c0_11] : memref<8x5xf32, #tpu.memory_space<smem>>
    %33 = vector.broadcast %32 : f32 to vector<8x256xf32>
    %34 = arith.mulf %33, %1 : vector<8x256xf32>
    %c1_12 = arith.constant 1 : index
    %c1_13 = arith.constant 1 : index
    %35 = memref.load %arg1[%c1_12, %c1_13] : memref<8x5xf32, #tpu.memory_space<smem>>
    %36 = vector.broadcast %35 : f32 to vector<8x256xf32>
    %37 = arith.mulf %36, %2 : vector<8x256xf32>
    %38 = arith.addf %34, %37 : vector<8x256xf32>
    %c1_14 = arith.constant 1 : index
    %c2_15 = arith.constant 2 : index
    %39 = memref.load %arg1[%c1_14, %c2_15] : memref<8x5xf32, #tpu.memory_space<smem>>
    %40 = vector.broadcast %39 : f32 to vector<8x256xf32>
    %41 = arith.mulf %40, %3 : vector<8x256xf32>
    %42 = arith.addf %38, %41 : vector<8x256xf32>
    %c1_16 = arith.constant 1 : index
    %c3_17 = arith.constant 3 : index
    %43 = memref.load %arg1[%c1_16, %c3_17] : memref<8x5xf32, #tpu.memory_space<smem>>
    %44 = vector.broadcast %43 : f32 to vector<8x256xf32>
    %45 = arith.mulf %44, %4 : vector<8x256xf32>
    %46 = arith.addf %42, %45 : vector<8x256xf32>
    %c1_18 = arith.constant 1 : index
    %c4_19 = arith.constant 4 : index
    %47 = memref.load %arg1[%c1_18, %c4_19] : memref<8x5xf32, #tpu.memory_space<smem>>
    %48 = vector.broadcast %47 : f32 to vector<8x256xf32>
    %49 = arith.mulf %48, %5 : vector<8x256xf32>
    %50 = arith.addf %46, %49 : vector<8x256xf32>
    %c1_20 = arith.constant 1 : index
    %51 = memref.load %arg2[%c1_20] : memref<8xf32, #tpu.memory_space<smem>>
    %52 = vector.broadcast %51 : f32 to vector<8x256xf32>
    %53 = arith.addf %50, %52 : vector<8x256xf32>
    %cst_21 = arith.constant 0.000000e+00 : f32
    %54 = vector.broadcast %cst_21 : f32 to vector<8x256xf32>
    %55 = arith.maximumf %53, %54 : vector<8x256xf32>
    %56 = arith.truncf %55 : vector<8x256xf32> to vector<8x256xbf16>
    %c0_22 = arith.constant 0 : index
    %c256 = arith.constant 256 : index
    %57 = vector.load %arg7[%c0_22, %c256] : memref<8x2048xbf16, #tpu.memory_space<vmem>>, vector<8x256xbf16>
    tpu.vector_store %arg7[%c0_22, %c256], %56 {strides = array<i32>} : memref<8x2048xbf16, #tpu.memory_space<vmem>>, vector<8x256xbf16>,
    %c2_23 = arith.constant 2 : index
    %c0_24 = arith.constant 0 : index
    %58 = memref.load %arg1[%c2_23, %c0_24] : memref<8x5xf32, #tpu.memory_space<smem>>
    %59 = vector.broadcast %58 : f32 to vector<8x256xf32>
    %60 = arith.mulf %59, %1 : vector<8x256xf32>
    %c2_25 = arith.constant 2 : index
    %c1_26 = arith.constant 1 : index
    %61 = memref.load %arg1[%c2_25, %c1_26] : memref<8x5xf32, #tpu.memory_space<smem>>
    %62 = vector.broadcast %61 : f32 to vector<8x256xf32>
    %63 = arith.mulf %62, %2 : vector<8x256xf32>
    %64 = arith.addf %60, %63 : vector<8x256xf32>
    %c2_27 = arith.constant 2 : index
    %c2_28 = arith.constant 2 : index
    %65 = memref.load %arg1[%c2_27, %c2_28] : memref<8x5xf32, #tpu.memory_space<smem>>
    %66 = vector.broadcast %65 : f32 to vector<8x256xf32>
    %67 = arith.mulf %66, %3 : vector<8x256xf32>
    %68 = arith.addf %64, %67 : vector<8x256xf32>
    %c2_29 = arith.constant 2 : index
    %c3_30 = arith.constant 3 : index
    %69 = memref.load %arg1[%c2_29, %c3_30] : memref<8x5xf32, #tpu.memory_space<smem>>
    %70 = vector.broadcast %69 : f32 to vector<8x256xf32>
    %71 = arith.mulf %70, %4 : vector<8x256xf32>
    %72 = arith.addf %68, %71 : vector<8x256xf32>
    %c2_31 = arith.constant 2 : index
    %c4_32 = arith.constant 4 : index
    %73 = memref.load %arg1[%c2_31, %c4_32] : memref<8x5xf32, #tpu.memory_space<smem>>
    %74 = vector.broadcast %73 : f32 to vector<8x256xf32>
    %75 = arith.mulf %74, %5 : vector<8x256xf32>
    %76 = arith.addf %72, %75 : vector<8x256xf32>
    %c2_33 = arith.constant 2 : index
    %77 = memref.load %arg2[%c2_33] : memref<8xf32, #tpu.memory_space<smem>>
    %78 = vector.broadcast %77 : f32 to vector<8x256xf32>
    %79 = arith.addf %76, %78 : vector<8x256xf32>
    %cst_34 = arith.constant 0.000000e+00 : f32
    %80 = vector.broadcast %cst_34 : f32 to vector<8x256xf32>
    %81 = arith.maximumf %79, %80 : vector<8x256xf32>
    %82 = arith.truncf %81 : vector<8x256xf32> to vector<8x256xbf16>
    %c0_35 = arith.constant 0 : index
    %c512 = arith.constant 512 : index
    %83 = vector.load %arg7[%c0_35, %c512] : memref<8x2048xbf16, #tpu.memory_space<vmem>>, vector<8x256xbf16>
    tpu.vector_store %arg7[%c0_35, %c512], %82 {strides = array<i32>} : memref<8x2048xbf16, #tpu.memory_space<vmem>>, vector<8x256xbf16>,
    %c3_36 = arith.constant 3 : index
    %c0_37 = arith.constant 0 : index
    %84 = memref.load %arg1[%c3_36, %c0_37] : memref<8x5xf32, #tpu.memory_space<smem>>
    %85 = vector.broadcast %84 : f32 to vector<8x256xf32>
    %86 = arith.mulf %85, %1 : vector<8x256xf32>
    %c3_38 = arith.constant 3 : index
    %c1_39 = arith.constant 1 : index
    %87 = memref.load %arg1[%c3_38, %c1_39] : memref<8x5xf32, #tpu.memory_space<smem>>
    %88 = vector.broadcast %87 : f32 to vector<8x256xf32>
    %89 = arith.mulf %88, %2 : vector<8x256xf32>
    %90 = arith.addf %86, %89 : vector<8x256xf32>
    %c3_40 = arith.constant 3 : index
    %c2_41 = arith.constant 2 : index
    %91 = memref.load %arg1[%c3_40, %c2_41] : memref<8x5xf32, #tpu.memory_space<smem>>
    %92 = vector.broadcast %91 : f32 to vector<8x256xf32>
    %93 = arith.mulf %92, %3 : vector<8x256xf32>
    %94 = arith.addf %90, %93 : vector<8x256xf32>
    %c3_42 = arith.constant 3 : index
    %c3_43 = arith.constant 3 : index
    %95 = memref.load %arg1[%c3_42, %c3_43] : memref<8x5xf32, #tpu.memory_space<smem>>
    %96 = vector.broadcast %95 : f32 to vector<8x256xf32>
    %97 = arith.mulf %96, %4 : vector<8x256xf32>
    %98 = arith.addf %94, %97 : vector<8x256xf32>
    %c3_44 = arith.constant 3 : index
    %c4_45 = arith.constant 4 : index
    %99 = memref.load %arg1[%c3_44, %c4_45] : memref<8x5xf32, #tpu.memory_space<smem>>
    %100 = vector.broadcast %99 : f32 to vector<8x256xf32>
    %101 = arith.mulf %100, %5 : vector<8x256xf32>
    %102 = arith.addf %98, %101 : vector<8x256xf32>
    %c3_46 = arith.constant 3 : index
    %103 = memref.load %arg2[%c3_46] : memref<8xf32, #tpu.memory_space<smem>>
    %104 = vector.broadcast %103 : f32 to vector<8x256xf32>
    %105 = arith.addf %102, %104 : vector<8x256xf32>
    %cst_47 = arith.constant 0.000000e+00 : f32
    %106 = vector.broadcast %cst_47 : f32 to vector<8x256xf32>
    %107 = arith.maximumf %105, %106 : vector<8x256xf32>
    %108 = arith.truncf %107 : vector<8x256xf32> to vector<8x256xbf16>
    %c0_48 = arith.constant 0 : index
    %c768 = arith.constant 768 : index
    %109 = vector.load %arg7[%c0_48, %c768] : memref<8x2048xbf16, #tpu.memory_space<vmem>>, vector<8x256xbf16>
    tpu.vector_store %arg7[%c0_48, %c768], %108 {strides = array<i32>} : memref<8x2048xbf16, #tpu.memory_space<vmem>>, vector<8x256xbf16>,
    %c4_49 = arith.constant 4 : index
    %c0_50 = arith.constant 0 : index
    %110 = memref.load %arg1[%c4_49, %c0_50] : memref<8x5xf32, #tpu.memory_space<smem>>
    %111 = vector.broadcast %110 : f32 to vector<8x256xf32>
    %112 = arith.mulf %111, %1 : vector<8x256xf32>
    %c4_51 = arith.constant 4 : index
    %c1_52 = arith.constant 1 : index
    %113 = memref.load %arg1[%c4_51, %c1_52] : memref<8x5xf32, #tpu.memory_space<smem>>
    %114 = vector.broadcast %113 : f32 to vector<8x256xf32>
    %115 = arith.mulf %114, %2 : vector<8x256xf32>
    %116 = arith.addf %112, %115 : vector<8x256xf32>
    %c4_53 = arith.constant 4 : index
    %c2_54 = arith.constant 2 : index
    %117 = memref.load %arg1[%c4_53, %c2_54] : memref<8x5xf32, #tpu.memory_space<smem>>
    %118 = vector.broadcast %117 : f32 to vector<8x256xf32>
    %119 = arith.mulf %118, %3 : vector<8x256xf32>
    %120 = arith.addf %116, %119 : vector<8x256xf32>
    %c4_55 = arith.constant 4 : index
    %c3_56 = arith.constant 3 : index
    %121 = memref.load %arg1[%c4_55, %c3_56] : memref<8x5xf32, #tpu.memory_space<smem>>
    %122 = vector.broadcast %121 : f32 to vector<8x256xf32>
    %123 = arith.mulf %122, %4 : vector<8x256xf32>
    %124 = arith.addf %120, %123 : vector<8x256xf32>
    %c4_57 = arith.constant 4 : index
    %c4_58 = arith.constant 4 : index
    %125 = memref.load %arg1[%c4_57, %c4_58] : memref<8x5xf32, #tpu.memory_space<smem>>
    %126 = vector.broadcast %125 : f32 to vector<8x256xf32>
    %127 = arith.mulf %126, %5 : vector<8x256xf32>
    %128 = arith.addf %124, %127 : vector<8x256xf32>
    %c4_59 = arith.constant 4 : index
    %129 = memref.load %arg2[%c4_59] : memref<8xf32, #tpu.memory_space<smem>>
    %130 = vector.broadcast %129 : f32 to vector<8x256xf32>
    %131 = arith.addf %128, %130 : vector<8x256xf32>
    %cst_60 = arith.constant 0.000000e+00 : f32
    %132 = vector.broadcast %cst_60 : f32 to vector<8x256xf32>
    %133 = arith.maximumf %131, %132 : vector<8x256xf32>
    %134 = arith.truncf %133 : vector<8x256xf32> to vector<8x256xbf16>
    %c0_61 = arith.constant 0 : index
    %c1024 = arith.constant 1024 : index
    %135 = vector.load %arg7[%c0_61, %c1024] : memref<8x2048xbf16, #tpu.memory_space<vmem>>, vector<8x256xbf16>
    tpu.vector_store %arg7[%c0_61, %c1024], %134 {strides = array<i32>} : memref<8x2048xbf16, #tpu.memory_space<vmem>>, vector<8x256xbf16>,
    %c5 = arith.constant 5 : index
    %c0_62 = arith.constant 0 : index
    %136 = memref.load %arg1[%c5, %c0_62] : memref<8x5xf32, #tpu.memory_space<smem>>
    %137 = vector.broadcast %136 : f32 to vector<8x256xf32>
    %138 = arith.mulf %137, %1 : vector<8x256xf32>
    %c5_63 = arith.constant 5 : index
    %c1_64 = arith.constant 1 : index
    %139 = memref.load %arg1[%c5_63, %c1_64] : memref<8x5xf32, #tpu.memory_space<smem>>
    %140 = vector.broadcast %139 : f32 to vector<8x256xf32>
    %141 = arith.mulf %140, %2 : vector<8x256xf32>
    %142 = arith.addf %138, %141 : vector<8x256xf32>
    %c5_65 = arith.constant 5 : index
    %c2_66 = arith.constant 2 : index
    %143 = memref.load %arg1[%c5_65, %c2_66] : memref<8x5xf32, #tpu.memory_space<smem>>
    %144 = vector.broadcast %143 : f32 to vector<8x256xf32>
    %145 = arith.mulf %144, %3 : vector<8x256xf32>
    %146 = arith.addf %142, %145 : vector<8x256xf32>
    %c5_67 = arith.constant 5 : index
    %c3_68 = arith.constant 3 : index
    %147 = memref.load %arg1[%c5_67, %c3_68] : memref<8x5xf32, #tpu.memory_space<smem>>
    %148 = vector.broadcast %147 : f32 to vector<8x256xf32>
    %149 = arith.mulf %148, %4 : vector<8x256xf32>
    %150 = arith.addf %146, %149 : vector<8x256xf32>
    %c5_69 = arith.constant 5 : index
    %c4_70 = arith.constant 4 : index
    %151 = memref.load %arg1[%c5_69, %c4_70] : memref<8x5xf32, #tpu.memory_space<smem>>
    %152 = vector.broadcast %151 : f32 to vector<8x256xf32>
    %153 = arith.mulf %152, %5 : vector<8x256xf32>
    %154 = arith.addf %150, %153 : vector<8x256xf32>
    %c5_71 = arith.constant 5 : index
    %155 = memref.load %arg2[%c5_71] : memref<8xf32, #tpu.memory_space<smem>>
    %156 = vector.broadcast %155 : f32 to vector<8x256xf32>
    %157 = arith.addf %154, %156 : vector<8x256xf32>
    %cst_72 = arith.constant 0.000000e+00 : f32
    %158 = vector.broadcast %cst_72 : f32 to vector<8x256xf32>
    %159 = arith.maximumf %157, %158 : vector<8x256xf32>
    %160 = arith.truncf %159 : vector<8x256xf32> to vector<8x256xbf16>
    %c0_73 = arith.constant 0 : index
    %c1280 = arith.constant 1280 : index
    %161 = vector.load %arg7[%c0_73, %c1280] : memref<8x2048xbf16, #tpu.memory_space<vmem>>, vector<8x256xbf16>
    tpu.vector_store %arg7[%c0_73, %c1280], %160 {strides = array<i32>} : memref<8x2048xbf16, #tpu.memory_space<vmem>>, vector<8x256xbf16>,
    %c6 = arith.constant 6 : index
    %c0_74 = arith.constant 0 : index
    %162 = memref.load %arg1[%c6, %c0_74] : memref<8x5xf32, #tpu.memory_space<smem>>
    %163 = vector.broadcast %162 : f32 to vector<8x256xf32>
    %164 = arith.mulf %163, %1 : vector<8x256xf32>
    %c6_75 = arith.constant 6 : index
    %c1_76 = arith.constant 1 : index
    %165 = memref.load %arg1[%c6_75, %c1_76] : memref<8x5xf32, #tpu.memory_space<smem>>
    %166 = vector.broadcast %165 : f32 to vector<8x256xf32>
    %167 = arith.mulf %166, %2 : vector<8x256xf32>
    %168 = arith.addf %164, %167 : vector<8x256xf32>
    %c6_77 = arith.constant 6 : index
    %c2_78 = arith.constant 2 : index
    %169 = memref.load %arg1[%c6_77, %c2_78] : memref<8x5xf32, #tpu.memory_space<smem>>
    %170 = vector.broadcast %169 : f32 to vector<8x256xf32>
    %171 = arith.mulf %170, %3 : vector<8x256xf32>
    %172 = arith.addf %168, %171 : vector<8x256xf32>
    %c6_79 = arith.constant 6 : index
    %c3_80 = arith.constant 3 : index
    %173 = memref.load %arg1[%c6_79, %c3_80] : memref<8x5xf32, #tpu.memory_space<smem>>
    %174 = vector.broadcast %173 : f32 to vector<8x256xf32>
    %175 = arith.mulf %174, %4 : vector<8x256xf32>
    %176 = arith.addf %172, %175 : vector<8x256xf32>
    %c6_81 = arith.constant 6 : index
    %c4_82 = arith.constant 4 : index
    %177 = memref.load %arg1[%c6_81, %c4_82] : memref<8x5xf32, #tpu.memory_space<smem>>
    %178 = vector.broadcast %177 : f32 to vector<8x256xf32>
    %179 = arith.mulf %178, %5 : vector<8x256xf32>
    %180 = arith.addf %176, %179 : vector<8x256xf32>
    %c6_83 = arith.constant 6 : index
    %181 = memref.load %arg2[%c6_83] : memref<8xf32, #tpu.memory_space<smem>>
    %182 = vector.broadcast %181 : f32 to vector<8x256xf32>
    %183 = arith.addf %180, %182 : vector<8x256xf32>
    %cst_84 = arith.constant 0.000000e+00 : f32
    %184 = vector.broadcast %cst_84 : f32 to vector<8x256xf32>
    %185 = arith.maximumf %183, %184 : vector<8x256xf32>
    %186 = arith.truncf %185 : vector<8x256xf32> to vector<8x256xbf16>
    %c0_85 = arith.constant 0 : index
    %c1536 = arith.constant 1536 : index
    %187 = vector.load %arg7[%c0_85, %c1536] : memref<8x2048xbf16, #tpu.memory_space<vmem>>, vector<8x256xbf16>
    tpu.vector_store %arg7[%c0_85, %c1536], %186 {strides = array<i32>} : memref<8x2048xbf16, #tpu.memory_space<vmem>>, vector<8x256xbf16>,
    %c7 = arith.constant 7 : index
    %c0_86 = arith.constant 0 : index
    %188 = memref.load %arg1[%c7, %c0_86] : memref<8x5xf32, #tpu.memory_space<smem>>
    %189 = vector.broadcast %188 : f32 to vector<8x256xf32>
    %190 = arith.mulf %189, %1 : vector<8x256xf32>
    %c7_87 = arith.constant 7 : index
    %c1_88 = arith.constant 1 : index
    %191 = memref.load %arg1[%c7_87, %c1_88] : memref<8x5xf32, #tpu.memory_space<smem>>
    %192 = vector.broadcast %191 : f32 to vector<8x256xf32>
    %193 = arith.mulf %192, %2 : vector<8x256xf32>
    %194 = arith.addf %190, %193 : vector<8x256xf32>
    %c7_89 = arith.constant 7 : index
    %c2_90 = arith.constant 2 : index
    %195 = memref.load %arg1[%c7_89, %c2_90] : memref<8x5xf32, #tpu.memory_space<smem>>
    %196 = vector.broadcast %195 : f32 to vector<8x256xf32>
    %197 = arith.mulf %196, %3 : vector<8x256xf32>
    %198 = arith.addf %194, %197 : vector<8x256xf32>
    %c7_91 = arith.constant 7 : index
    %c3_92 = arith.constant 3 : index
    %199 = memref.load %arg1[%c7_91, %c3_92] : memref<8x5xf32, #tpu.memory_space<smem>>
    %200 = vector.broadcast %199 : f32 to vector<8x256xf32>
    %201 = arith.mulf %200, %4 : vector<8x256xf32>
    %202 = arith.addf %198, %201 : vector<8x256xf32>
    %c7_93 = arith.constant 7 : index
    %c4_94 = arith.constant 4 : index
    %203 = memref.load %arg1[%c7_93, %c4_94] : memref<8x5xf32, #tpu.memory_space<smem>>
    %204 = vector.broadcast %203 : f32 to vector<8x256xf32>
    %205 = arith.mulf %204, %5 : vector<8x256xf32>
    %206 = arith.addf %202, %205 : vector<8x256xf32>
    %c7_95 = arith.constant 7 : index
    %207 = memref.load %arg2[%c7_95] : memref<8xf32, #tpu.memory_space<smem>>
    %208 = vector.broadcast %207 : f32 to vector<8x256xf32>
    %209 = arith.addf %206, %208 : vector<8x256xf32>
    %cst_96 = arith.constant 0.000000e+00 : f32
    %210 = vector.broadcast %cst_96 : f32 to vector<8x256xf32>
    %211 = arith.maximumf %209, %210 : vector<8x256xf32>
    %212 = arith.truncf %211 : vector<8x256xf32> to vector<8x256xbf16>
    %c0_97 = arith.constant 0 : index
    %c1792 = arith.constant 1792 : index
    %213 = vector.load %arg7[%c0_97, %c1792] : memref<8x2048xbf16, #tpu.memory_space<vmem>>, vector<8x256xbf16>
    tpu.vector_store %arg7[%c0_97, %c1792], %212 {strides = array<i32>} : memref<8x2048xbf16, #tpu.memory_space<vmem>>, vector<8x256xbf16>,
    %c0_98 = arith.constant 0 : index
    %c0_99 = arith.constant 0 : index
    %214 = vector.load %arg7[%c0_98, %c0_99] : memref<8x2048xbf16, #tpu.memory_space<vmem>>, vector<8x2048xbf16>
    %c0_100 = arith.constant 0 : index
    %c0_101 = arith.constant 0 : index
    %215 = vector.load %arg4[%c0_100, %c0_101] : memref<2048x3xbf16, #tpu.memory_space<vmem>>, vector<2048x3xbf16>
    %cst_102 = arith.constant dense<0.000000e+00> : vector<8x3xf32>
    %216 = tpu.matmul %214, %215, %cst_102 {dimension_numbers = #tpu.dot_dimension_numbers<[1], [0], [0], [1], [0, 0, 1, 1], [], []>} : vector<8x2048xbf16>, vector<2048x3xbf16>, vector<8x3xf32> -> vector<8x3xf32>
    %c0_103 = arith.constant 0 : index
    %c0_104 = arith.constant 0 : index
    %217 = vector.load %arg5[%c0_103, %c0_104] : memref<1x3xf32, #tpu.memory_space<vmem>>, vector<1x3xf32>
    %218 = vector.broadcast %217 : vector<1x3xf32> to vector<8x3xf32>
    %219 = arith.addf %216, %218 : vector<8x3xf32>
    %c0_105 = arith.constant 0 : index
    %c0_106 = arith.constant 0 : index
    %220 = vector.load %arg6[%c0_105, %c0_106] : memref<8x3xf32, #tpu.memory_space<vmem>>, vector<8x3xf32>
    tpu.vector_store %arg6[%c0_105, %c0_106], %219 {strides = array<i32>} : memref<8x3xf32, #tpu.memory_space<vmem>>, vector<8x3xf32>,
    return
  }
  func.func @transform_0(%arg0: i32) -> (i32, i32) {
    %c0_i32 = arith.constant 0 : i32
    %c0_i32_0 = arith.constant 0 : i32
    %c0_i32_1 = arith.constant 0 : i32
    return %c0_i32, %c0_i32_0 : i32, i32
  }
  func.func @transform_1(%arg0: i32) -> i32 {
    %c0_i32 = arith.constant 0 : i32
    %c0_i32_0 = arith.constant 0 : i32
    return %c0_i32 : i32
  }
  func.func @transform_2(%arg0: i32) -> (i32, i32) {
    %c0_i32 = arith.constant 0 : i32
    %c0_i32_0 = arith.constant 0 : i32
    return %arg0, %c0_i32 : i32, i32
  }
  func.func @transform_3(%arg0: i32) -> (i32, i32) {
    %c0_i32 = arith.constant 0 : i32
    %c0_i32_0 = arith.constant 0 : i32
    %c0_i32_1 = arith.constant 0 : i32
    return %c0_i32, %c0_i32_0 : i32, i32
  }
  func.func @transform_4(%arg0: i32) -> (i32, i32) {
    %c0_i32 = arith.constant 0 : i32
    %c0_i32_0 = arith.constant 0 : i32
    %c0_i32_1 = arith.constant 0 : i32
    return %c0_i32, %c0_i32_0 : i32, i32
  }
  func.func @transform_5(%arg0: i32) -> (i32, i32) {
    %c0_i32 = arith.constant 0 : i32
    %c0_i32_0 = arith.constant 0 : i32
    return %arg0, %c0_i32 : i32, i32
  }
}

</mosaic_0001>

<bundles_post_ra>
// kernel: tpu_custom_call.1
= control target key start
LH: loop header
LB: loop body
LE: loop exit
PB: predicated region body
PF: predicated region fallthrough
CT: control target
= control target key end

     0   :  { %10 = vsyncpa [#allocation4], 0  ;;  %s3744_s0 = inlined_call_operand.vmem [shape: f32[8,5], index: 0, kind: input, shape index: {}]   ;;  %s3745_s1 = inlined_call_operand.vmem [shape: f32[8], index: 1, kind: input, shape index: {}]   ;;  %s3746_s2 = inlined_call_operand.vmem [shape: f32[8,260], index: 2, kind: input, shape index: {}]   ;;  %s3747_s3 = inlined_call_operand.vmem [shape: bf16[2048,3], index: 3, kind: input, shape index: {}]   ;;  %s3748_s4 = inlined_call_operand.vmem [shape: f32[1,3], index: 4, kind: input, shape index: {}]   ;;  %s3749_s5 = inlined_call_operand.vmem [shape: f32[8,3], index: 5, kind: output, shape index: {}]  }
   0x1   :  { %s18_s20 = sshll.u32 %s3744_s0, 4  ;;  %s19_s20 = int_to_ptr.vmem [resolvable:$true] %s18_s20 }
   0x2   :  { %11 = vsyncpa [#allocation6], 0  ;;  %s28_s23 = sshll.u32 %s3745_s1, 4  ;;  %s2806_s24 = scalar_lea.vmem %s19_s20, 128  ;;  %s29_s23 = int_to_ptr.vmem [resolvable:$true] %s28_s23 }
   0x3   :  { %p2807_p0 = scmp.ne.s32.totalorder %s19_s20, %s2806_s24  ;;  %p2811_p1 = scmp.lt.s32.totalorder %s19_s20, %s19_s20 }
   0x4   :  { %p2812_p2 = scmp.lt.s32.totalorder %s2806_s24, %s2806_s24 }
   0x6   :  { %p2813_p3 = por %p2812_p2, %p2811_p1 }
   0x8   :  { %p2814_p4 = pnand %p2813_p3, %p2807_p0 }
   0xa   :  { %2817 = shalt.err (!%p2814_p4)
}
   0xb   :  { %s2834_s25 = smov [#allocation3]   ;;  %s2818_s26 = scalar_lea.vmem %s29_s23, 16 }
   0xc   :  { %21 = dma.vmem_to_smem %s19_s20, 128, %s2834_s25, [#allocation4]  }
   0xd   :  { %p2819_p5 = scmp.ne.s32.totalorder %s29_s23, %s2818_s26  ;;  %p2823_p6 = scmp.lt.s32.totalorder %s29_s23, %s29_s23 }
   0xe   :  { %p2824_p7 = scmp.lt.s32.totalorder %s2818_s26, %s2818_s26 }
  0x10   :  { %p2825_p8 = por %p2824_p7, %p2823_p6 }
  0x12   :  { %p2826_p9 = pnand %p2825_p8, %p2819_p5 }
  0x14   :  { %2829 = shalt.err (!%p2826_p9)
}
  0x15   :  { %s2835_s0 = smov [#allocation5]  }
  0x16   :  { %31 = dma.vmem_to_smem %s29_s23, 16, %s2835_s0, [#allocation6]  }
  0x17   :  { %2830 = dma.done.wait [#allocation4], 128  }
  0x18   :  { %2831 = vsyncadd [#allocation4], 4294967168 }
  0x19   :  { %2832 = dma.done.wait [#allocation6], 16  }
  0x1a   :  { %2833 = vsyncadd [#allocation6], 4294967280 }
  0x1b   :  { %44 = sfence }
  0x1c   :  { %s2268_s1 = sld [smem:[#allocation3 + $0x1]]  ;;  %v2879_v0 = vld [vmem:[%s3746_s2 + $0x8] sm:$0xff]  ;;  %v2884_v1 = vld [vmem:[%s3746_s2] sm:$0xff]  ;;  %v2889_v3 = vld [vmem:[%s3746_s2 + $0x10] sm:$0xff]  ;;  %s2836_s14 = smov 127   ;;  %vm67_vm0 = vcmask 1039360  }
  0x1d   :  { %s2269_s27 = sld [smem:[#allocation3 + $0x2]]  ;;  %v2673_v7 = vld [vmem:[%s3747_s3 + $0x78] sm:$0xff]   ;;  %v2675_v12 = vld [vmem:[%s3747_s3 + $0x70] sm:$0xff]   ;;  %s2837_s20 = smov 126   ;;  %v2677_v16 = vld [vmem:[%s3747_s3 + $0x68] sm:$0xff]   ;;  %vm88_vm1 = vcmask 1031168  }
  0x1e   :  { %s2274_s28 = sld [smem:[#allocation3 + $0x81]]  ;;  %v2674_v8 = vld [vmem:[%s3747_s3 + $0x38] sm:$0xff]   ;;  %2491 = vmatprep.subr.bf16.mxu0 %v2673_v7  ;;  %v2676_v13 = vld [vmem:[%s3747_s3 + $0x30] sm:$0xff]   ;;  %v2678_v17 = vld [vmem:[%s3747_s3 + $0x28] sm:$0xff]   ;;  %s2838_s19 = smov 125   ;;  %vm109_vm2 = vcmask 1022976  }
  0x1f   :  { %s2270_s15 = sld [smem:[#allocation3 + $0x3]]  ;;  %2492 = vmatpush3.bf16.msra.mxu0 %v2674_v8  ;;  %v2679_v18 = vld [vmem:[%s3747_s3 + $0xf8] sm:$0xff]   ;;  %v2681_v23 = vld [vmem:[%s3747_s3 + $0x60] sm:$0xff]   ;;  %v2683_v25 = vld [vmem:[%s3747_s3 + $0xf0] sm:$0xff]   ;;  %vm130_vm3 = vcmask 1014784   ;;  %vm2260_vm4 = vcmask 23552  }
  0x20   :  { %s2275_s21 = sld [smem:[#allocation3 + $0x82]]  ;;  %2493 = vmatprep.subr.bf16.mxu0 %v2675_v12  ;;  %v2680_v21 = vld [vmem:[%s3747_s3 + $0xb8] sm:$0xff]   ;;  %2513 = vmatprep.subr.bf16.mxu1 %v2679_v18  ;;  %v2682_v24 = vld [vmem:[%s3747_s3 + $0x20] sm:$0xff]   ;;  %v2684_v28 = vld [vmem:[%s3747_s3 + $0xb0] sm:$0xff]  }
  0x21   :  { %2514 = vmatpush3.bf16.msra.mxu1 %v2680_v21  ;;  %s2271_s11 = sld [smem:[#allocation3 + $0x4]]  ;;  %v2685_v30 = vld [vmem:[%s3747_s3 + $0x58] sm:$0xff]   ;;  %v2687_v32 = vld [vmem:[%s3747_s3 + $0xe8] sm:$0xff]   ;;  %v2689_v36 = vld [vmem:[%s3747_s3 + $0x50] sm:$0xff]  }
  0x22   :  { %v54_v2 = vstv %s2268_s1  ;;  %2515 = vmatprep.subr.bf16.mxu1 %v2683_v25  ;;  %v2686_v31 = vld [vmem:[%s3747_s3 + $0x18] sm:$0xff]   ;;  %v2688_v35 = vld [vmem:[%s3747_s3 + $0xa8] sm:$0xff]   ;;  %v2690_v37 = vld [vmem:[%s3747_s3 + $0x10] sm:$0xff]   ;;  %s2277_s30 = sld [smem:[#allocation3 + $0x84]] }
  0x23   :  { %v56_v4 = vmul.f32 %v54_v2, %v2879_v0  ;;  %v55_v5 = vmul.f32 %v54_v2, %v2884_v1  ;;  %v75_v6 = vstv %s2269_s27  ;;  %v57_v9 = vmul.f32 %v54_v2, %v2889_v3  ;;  %2494 = vmatpush3.bf16.msra.mxu0 %v2676_v13  ;;  %v2691_v41 = vld [vmem:[%s3747_s3 + $0xe0] sm:$0xff]   ;;  %v2693_v45 = vld [vmem:[%s3747_s3 + $0x48] sm:$0xff]   ;;  %v2695_v48 = vld [vmem:[%s3747_s3 + $0xd8] sm:$0xff]   ;;  %s2281_s26 = sld [smem:[#allocation3 + $0x101]] }
  0x24   :  { %v77_v10 = vmul.f32 %v75_v6, %v2879_v0  ;;  %v157_v11 = vstv %s2274_s28  ;;  %v78_v14 = vmul.f32 %v75_v6, %v2889_v3  ;;  %v76_v20 = vmul.f32 %v75_v6, %v2884_v1  ;;  %2495 = vmatprep.subr.bf16.mxu0 %v2677_v16  ;;  %v2692_v42 = vld [vmem:[%s3747_s3 + $0xa0] sm:$0xff]   ;;  %v2694_v47 = vld [vmem:[%s3747_s3 + $0x8] sm:$0xff]   ;;  %v2696_v49 = vld [vmem:[%s3747_s3 + $0x98] sm:$0xff]   ;;  %s2282_s29 = sld [smem:[#allocation3 + $0x102]] }
  0x25   :  { %63 = vrot.lane.b32.xlu0 %v56_v4, %s2836_s14  ;;  %61 = vrot.lane.b32.xlu1 %v55_v5, %s2836_s14  ;;  %v159_v15 = vmul.f32 %v157_v11, %v2879_v0  ;;  %v160_v19 = vmul.f32 %v157_v11, %v2889_v3  ;;  %v96_v22 = vstv %s2270_s15  ;;  %v158_v26 = vmul.f32 %v157_v11, %v2884_v1  ;;  %s2839_s15 = smov 124   ;;  %v2697_v52 = vld [vmem:[%s3747_s3 + $0x40] sm:$0xff]   ;;  %s2288_s9 = sld [smem:[#allocation3 + $0x181]] }
  0x26   :  { %v98_v27 = vmul.f32 %v96_v22, %v2879_v0  ;;  %v177_v29 = vstv %s2275_s21  ;;  %2516 = vmatpush3.bf16.msra.mxu1 %v2684_v28  ;;  %v99_v33 = vmul.f32 %v96_v22, %v2889_v3  ;;  %s2276_s21 = sld [smem:[#allocation3 + $0x83]]  ;;  %v97_v39 = vmul.f32 %v96_v22, %v2884_v1  ;;  %v2698_v53 = vld [vmem:[%s3747_s3] sm:$0xff]   ;;  %v2699_v54 = vld [vmem:[%s3747_s3 + $0xd0] sm:$0xff]   ;;  %v2701_v59 = vld [vmem:[%s3747_s3 + $0xc8] sm:$0xff]  }
  0x27   :  { %2496 = vmatpush3.bf16.msra.mxu0 %v2678_v17  ;;  %v179_v34 = vmul.f32 %v177_v29, %v2879_v0  ;;  %2517 = vmatprep.subr.bf16.mxu1 %v2687_v32  ;;  %v180_v38 = vmul.f32 %v177_v29, %v2889_v3  ;;  %v117_v40 = vstv %s2271_s11  ;;  %v178_v43 = vmul.f32 %v177_v29, %v2884_v1  ;;  %v2700_v55 = vld [vmem:[%s3747_s3 + $0x90] sm:$0xff]   ;;  %v2702_v60 = vld [vmem:[%s3747_s3 + $0x88] sm:$0xff]   ;;  %v2703_v63 = vld [vmem:[%s3747_s3 + $0xc0] sm:$0xff]   ;;  %s2283_s12 = sld [smem:[#allocation3 + $0x103]] }
  0x28   :  { %2497 = vmatprep.subr.bf16.mxu0 %v2681_v23  ;;  %v119_v44 = vmul.f32 %v117_v40, %v2879_v0  ;;  %v120_v50 = vmul.f32 %v117_v40, %v2889_v3  ;;  %v118_v57 = vmul.f32 %v117_v40, %v2884_v1  ;;  %v217_v58 = vstv %s2277_s30  ;;  %v2704_v2 = vld [vmem:[%s3747_s3 + $0x80] sm:$0xff]   ;;  %s2289_s13 = sld [smem:[#allocation3 + $0x182]]  ;;  %v2711_v18 = vld [vmem:[%s3747_s3 + $0x1f8] sm:$0xff]  }
  0x29   :  { %65 = vrot.lane.b32.xlu0 %v57_v9, %s2836_s14  ;;  %84 = vrot.lane.b32.xlu1 %v77_v10, %s2837_s20  ;;  %v219_v62 = vmul.f32 %v217_v58, %v2879_v0  ;;  %v220_v4 = vmul.f32 %v217_v58, %v2889_v3  ;;  %v218_v5 = vmul.f32 %v217_v58, %v2884_v1  ;;  %v256_v6 = vstv %s2281_s26  ;;  %v2705_v10 = vld [vmem:[%s3747_s3 + $0x178] sm:$0xff]   ;;  %s2284_s18 = sld [smem:[#allocation3 + $0x104]] }
  0x2a   :  { %2518 = vmatpush3.bf16.msra.mxu1 %v2688_v35  ;;  %v258_v7 = vmul.f32 %v256_v6, %v2879_v0  ;;  %v259_v8 = vmul.f32 %v256_v6, %v2889_v3  ;;  %v276_v9 = vstv %s2282_s29  ;;  %v257_v11 = vmul.f32 %v256_v6, %v2884_v1  ;;  %s2291_s22 = sld [smem:[#allocation3 + $0x184]] }
  0x2b   :  { %2498 = vmatpush3.bf16.msra.mxu0 %v2682_v24  ;;  %2519 = vmatprep.subr.bf16.mxu1 %v2691_v41  ;;  %v278_v12 = vmul.f32 %v276_v9, %v2879_v0  ;;  %v355_v13 = vstv %s2288_s9  ;;  %v277_v17 = vmul.f32 %v276_v9, %v2884_v1  ;;  %s2295_s23 = sld [smem:[#allocation3 + $0x201]] }
  0x2c   :  { %2499 = vmatprep.subr.bf16.mxu0 %v2685_v30  ;;  %v197_v46 = vstv %s2276_s21  ;;  %v358_v16 = vmul.f32 %v355_v13, %v2889_v3  ;;  %s2290_s21 = sld [smem:[#allocation3 + $0x183]] }
  0x2d   :  { %86 = vrot.lane.b32.xlu0 %v78_v14, %s2837_s20  ;;  %166 = vrot.lane.b32.xlu1 %v159_v15, %s2836_s14  ;;  %v199_v51 = vmul.f32 %v197_v46, %v2879_v0  ;;  %v200_v56 = vmul.f32 %v197_v46, %v2889_v3  ;;  %v198_v61 = vmul.f32 %v197_v46, %v2884_v1  ;;  %s2296_s24 = sld [smem:[#allocation3 + $0x202]] }
  0x2e   :  { %2520 = vmatpush3.bf16.msra.mxu1 %v2692_v42  ;;  %v279_v14 = vmul.f32 %v276_v9, %v2889_v3  ;;  %v357_v15 = vmul.f32 %v355_v13, %v2879_v0  ;;  %v375_v22 = vstv %s2289_s13  ;;  %s2302_s25 = sld [smem:[#allocation3 + $0x281]] }
  0x2f   :  { %2500 = vmatpush3.bf16.msra.mxu0 %v2686_v31  ;;  %2521 = vmatprep.subr.bf16.mxu1 %v2695_v48  ;;  %v377_v24 = vmul.f32 %v375_v22, %v2879_v0  ;;  %v378_v25 = vmul.f32 %v375_v22, %v2889_v3  ;;  %v376_v28 = vmul.f32 %v375_v22, %v2884_v1  ;;  %s2297_s26 = sld [smem:[#allocation3 + $0x203]] }
  0x30   :  { %2501 = vmatprep.subr.bf16.mxu0 %v2689_v36  ;;  %v415_v35 = vstv %s2291_s22  ;;  %s2303_s0 = sld [smem:[#allocation3 + $0x282]] }
  0x31   :  { %168 = vrot.lane.b32.xlu0 %v160_v19, %s2836_s14  ;;  %82 = vrot.lane.b32.xlu1 %v76_v20, %s2837_s20  ;;  %v296_v19 = vstv %s2283_s12  ;;  %v356_v20 = vmul.f32 %v355_v13, %v2884_v1  ;;  %v454_v40 = vstv %s2295_s23  ;;  %s2298_s1 = sld [smem:[#allocation3 + $0x204]] }
  0x32   :  { %2522 = vmatpush3.bf16.msra.mxu1 %v2696_v49  ;;  %v298_v21 = vmul.f32 %v296_v19, %v2879_v0  ;;  %v299_v23 = vmul.f32 %v296_v19, %v2889_v3  ;;  %v395_v30 = vstv %s2290_s21  ;;  %v456_v41 = vmul.f32 %v454_v40, %v2879_v0  ;;  %s2304_s27 = sld [smem:[#allocation3 + $0x283]] }
  0x33   :  { %2502 = vmatpush3.bf16.msra.mxu0 %v2690_v37  ;;  %2523 = vmatprep.subr.bf16.mxu1 %v2699_v54  ;;  %v397_v32 = vmul.f32 %v395_v30, %v2879_v0  ;;  %v396_v36 = vmul.f32 %v395_v30, %v2884_v1  ;;  %v417_v37 = vmul.f32 %v415_v35, %v2879_v0  ;;  %s2305_s28 = sld [smem:[#allocation3 + $0x284]] }
  0x34   :  { %2503 = vmatprep.subr.bf16.mxu0 %v2693_v45  ;;  %v457_v42 = vmul.f32 %v454_v40, %v2889_v3  ;;  %v553_v46 = vstv %s2302_s25  ;;  %s3133_s29 = sld [smem:[#allocation3]] }
  0x35   :  { %164 = vrot.lane.b32.xlu0 %v158_v26, %s2836_s14  ;;  %105 = vrot.lane.b32.xlu1 %v98_v27, %s2838_s19  ;;  %v297_v26 = vmul.f32 %v296_v19, %v2884_v1  ;;  %v316_v27 = vstv %s2284_s18  ;;  %v555_v48 = vmul.f32 %v553_v46, %v2879_v0  ;;  %v556_v49 = vmul.f32 %v553_v46, %v2889_v3  ;;  %s2309_s30 = sld [smem:[#allocation3 + $0x301]] }
  0x36   :  { %2524 = vmatpush3.bf16.msra.mxu1 %v2700_v55  ;;  %v318_v29 = vmul.f32 %v316_v27, %v2879_v0  ;;  %v319_v31 = vmul.f32 %v316_v27, %v2889_v3  ;;  %v573_v54 = vstv %s2303_s0  ;;  %s2310_s10 = sld [smem:[#allocation3 + $0x302]] }
  0x37   :  { %2504 = vmatpush3.bf16.msra.mxu0 %v2694_v47  ;;  %2525 = vmatprep.subr.bf16.mxu1 %v2701_v59  ;;  %v576_v59 = vmul.f32 %v573_v54, %v2889_v3  ;;  %s2316_s13 = sld [smem:[#allocation3 + $0x381]] }
  0x38   :  { %2505 = vmatprep.subr.bf16.mxu0 %v2697_v52  ;;  %v554_v52 = vmul.f32 %v553_v46, %v2884_v1  ;;  %s3168_s16 = sld [smem:[#allocation3 + $0x80]] }
  0x39   :  { %107 = vrot.lane.b32.xlu0 %v99_v33, %s2838_s19  ;;  %186 = vrot.lane.b32.xlu1 %v179_v34, %s2837_s20  ;;  %v398_v33 = vmul.f32 %v395_v30, %v2889_v3  ;;  %v317_v34 = vmul.f32 %v316_v27, %v2884_v1  ;;  %s3172_s17 = sld [smem:[#allocation5]] }
  0x3a   :  { %2526 = vmatpush3.bf16.msra.mxu1 %v2702_v60  ;;  %s3191_s18 = sld [smem:[#allocation3 + $0x303]] }
  0x3b   :  { %2506 = vmatpush3.bf16.msra.mxu0 %v2698_v53  ;;  %2527 = vmatprep.subr.bf16.mxu1 %v2703_v63  ;;  %s3201_s21 = sld [smem:[#allocation3 + $0x382]] }
  0x3c   :  { %2535 = vmatprep.subr.bf16.mxu0 %v2705_v10  ;;  %s3212_s22 = sld [smem:[#allocation5 + $0x1]] }
  0x3d   :  { %188 = vrot.lane.b32.xlu0 %v180_v38, %s2837_s20  ;;  %103 = vrot.lane.b32.xlu1 %v97_v39, %s2838_s19  ;;  %v418_v38 = vmul.f32 %v415_v35, %v2889_v3  ;;  %v416_v39 = vmul.f32 %v415_v35, %v2884_v1  ;;  %s3230_s23 = sld [smem:[#allocation3 + $0x304]] }
  0x3e   :  { %2528 = vmatpush3.bf16.msra.mxu1 %v2704_v2  ;;  %v574_v2 = vmul.f32 %v573_v54, %v2884_v1  ;;  %s2319_s11 = sld [smem:[#allocation3 + $0x384]] }
  0x3f   :  { %2557 = vmatprep.subr.bf16.mxu1 %v2711_v18 }
  0x41   :  { %184 = vrot.lane.b32.xlu0 %v178_v43, %s2837_s20  ;;  %126 = vrot.lane.b32.xlu1 %v119_v44, %s2839_s15  ;;  %v474_v43 = vstv %s2296_s24  ;;  %v455_v44 = vmul.f32 %v454_v40, %v2884_v1 }
  0x42   :  { %v476_v45 = vmul.f32 %v474_v43, %v2879_v0  ;;  %v477_v47 = vmul.f32 %v474_v43, %v2889_v3 }
  0x45   :  { %128 = vrot.lane.b32.xlu0 %v120_v50, %s2839_s15  ;;  %206 = vrot.lane.b32.xlu1 %v199_v51, %s2838_s19  ;;  %v475_v50 = vmul.f32 %v474_v43, %v2884_v1  ;;  %v494_v51 = vstv %s2297_s26  ;;  %v751_v43 = vstv %s2316_s13  ;;  %s3362_s26 = sld [smem:[#allocation3 + $0x180]] }
  0x46   :  { %v496_v53 = vmul.f32 %v494_v51, %v2879_v0  ;;  %v497_v55 = vmul.f32 %v494_v51, %v2889_v3  ;;  %v495_v60 = vmul.f32 %v494_v51, %v2884_v1  ;;  %s3421_s13 = sld [smem:[#allocation5 + $0x3]] }
  0x49   :  { %208 = vrot.lane.b32.xlu0 %v200_v56, %s2838_s19  ;;  %124 = vrot.lane.b32.xlu1 %v118_v57, %s2839_s15  ;;  %v575_v56 = vmul.f32 %v573_v54, %v2879_v0 }
  0x4d   :  { %204 = vrot.lane.b32.xlu0 %v198_v61, %s2838_s19  ;;  %226 = vrot.lane.b32.xlu1 %v219_v62, %s2839_s15  ;;  %v514_v61 = vstv %s2298_s1  ;;  %s2318_s1 = sld [smem:[#allocation3 + $0x383]] }
  0x4e   :  { %v515_v13 = vmul.f32 %v514_v61, %v2884_v1  ;;  %v3152_v1 = vld [vmem:[%s3746_s2 + $0x8] sm:$0xff] }
  0x51   :  { %228 = vrot.lane.b32.xlu0 %v220_v4, %s2839_s15  ;;  %224 = vrot.lane.b32.xlu1 %v218_v5, %s2839_s15  ;;  %v516_v4 = vmul.f32 %v514_v61, %v2879_v0  ;;  %v593_v5 = vstv %s2304_s27  ;;  %s3577_s27 = sld [smem:[#allocation5 + $0x5]] }
  0x52   :  { %v595_v9 = vmul.f32 %v593_v5, %v2879_v0  ;;  %v3146_v0 = vld [vmem:[%s3746_s2] sm:$0xff] }
  0x55   :  { %265 = vrot.lane.b32.xlu0 %v258_v7, %s2836_s14  ;;  %267 = vrot.lane.b32.xlu1 %v259_v8, %s2836_s14  ;;  %v517_v8 = vmul.f32 %v514_v61, %v2889_v3 }
  0x59   :  { %263 = vrot.lane.b32.xlu0 %v257_v11, %s2836_s14  ;;  %285 = vrot.lane.b32.xlu1 %v278_v12, %s2837_s20  ;;  %v596_v12 = vmul.f32 %v593_v5, %v2889_v3 }
  0x5d   :  { %287 = vrot.lane.b32.xlu0 %v279_v14, %s2837_s20  ;;  %364 = vrot.lane.b32.xlu1 %v357_v15, %s2836_s14  ;;  %v613_v14 = vstv %s2305_s28  ;;  %s3691_s28 = sld [smem:[#allocation5 + $0x6]] }
  0x5e   :  { %v615_v3 = vmul.f32 %v3152_v1, %v613_v14  ;;  %v614_v22 = vmul.f32 %v3146_v0, %v613_v14 }
  0x61   :  { %366 = vrot.lane.b32.xlu0 %v358_v16, %s2836_s14  ;;  %283 = vrot.lane.b32.xlu1 %v277_v17, %s2837_s20  ;;  %v594_v17 = vmul.f32 %v3146_v0, %v593_v5 }
  0x65   :  { %362 = vrot.lane.b32.xlu0 %v356_v20, %s2836_s14  ;;  %305 = vrot.lane.b32.xlu1 %v298_v21, %s2838_s19  ;;  %v3162_v20 = vld [vmem:[%s3746_s2 + $0x10] sm:$0xff] }
  0x66   :  { %v616_v21 = vmul.f32 %v3162_v20, %v613_v14  ;;  %v754_v5 = vmul.f32 %v3162_v20, %v751_v43 }
  0x69   :  { %307 = vrot.lane.b32.xlu0 %v299_v23, %s2838_s19  ;;  %384 = vrot.lane.b32.xlu1 %v377_v24, %s2837_s20  ;;  %v50_v23 = vstv %s3133_s29  ;;  %v652_v24 = vstv %s2309_s30  ;;  %s3645_s30 = sld [smem:[#allocation3 + $0x300]] }
  0x6a   :  { %v655_v30 = vmul.f32 %v3162_v20, %v652_v24  ;;  %v653_v40 = vmul.f32 %v3146_v0, %v652_v24 }
  0x6d   :  { %386 = vrot.lane.b32.xlu0 %v378_v25, %s2837_s20  ;;  %303 = vrot.lane.b32.xlu1 %v297_v26, %s2838_s19  ;;  %v52_v25 = vmul.f32 %v3152_v1, %v50_v23 }
  0x71   :  { %382 = vrot.lane.b32.xlu0 %v376_v28, %s2837_s20  ;;  %325 = vrot.lane.b32.xlu1 %v318_v29, %s2839_s15  ;;  %v654_v29 = vmul.f32 %v3152_v1, %v652_v24  ;;  %v771_v24 = vstv %s3201_s21  ;;  %s3489_s21 = sld [smem:[#allocation3 + $0x200]] }
  0x75   :  { %327 = vrot.lane.b32.xlu0 %v319_v31, %s2839_s15  ;;  %404 = vrot.lane.b32.xlu1 %v397_v32, %s2838_s19  ;;  %v672_v32 = vstv %s2310_s10 }
  0x76   :  { %v675_v51 = vmul.f32 %v3162_v20, %v672_v32 }
  0x79   :  { %406 = vrot.lane.b32.xlu0 %v398_v33, %s2838_s19  ;;  %323 = vrot.lane.b32.xlu1 %v317_v34, %s2839_s15  ;;  %v51_v33 = vmul.f32 %v3146_v0, %v50_v23 }
  0x7d   :  { %402 = vrot.lane.b32.xlu0 %v396_v36, %s2838_s19  ;;  %424 = vrot.lane.b32.xlu1 %v417_v37, %s2839_s15 }
  0x81   :  { %426 = vrot.lane.b32.xlu0 %v418_v38, %s2839_s15  ;;  %422 = vrot.lane.b32.xlu1 %v416_v39, %s2839_s15 }
  0x85   :  { %463 = vrot.lane.b32.xlu0 %v456_v41, %s2836_s14  ;;  %465 = vrot.lane.b32.xlu1 %v457_v42, %s2836_s14  ;;  %v674_v41 = vmul.f32 %v3152_v1, %v672_v32 }
  0x89   :  { %461 = vrot.lane.b32.xlu0 %v455_v44, %s2836_s14  ;;  %483 = vrot.lane.b32.xlu1 %v476_v45, %s2837_s20  ;;  %v153_v45 = vstv %s3168_s16 }
  0x8d   :  { %485 = vrot.lane.b32.xlu0 %v477_v47, %s2837_s20  ;;  %562 = vrot.lane.b32.xlu1 %v555_v48, %s2836_s14 }
  0x91   :  { %564 = vrot.lane.b32.xlu0 %v556_v49, %s2836_s14  ;;  %481 = vrot.lane.b32.xlu1 %v475_v50, %s2837_s20 }
  0x95   :  { %560 = vrot.lane.b32.xlu0 %v554_v52, %s2836_s14  ;;  %503 = vrot.lane.b32.xlu1 %v496_v53, %s2838_s19  ;;  %v138_v52 = vstv %s3172_s17 }
  0x97   :  { %v3111_v57 = vpop.permute.xlu0 %63  ;;  %v3113_v58 = vpop.permute.xlu1 %61 }
  0x98   :  { %v68_v37 = vsel %vm67_vm0, %v3113_v58, %v3111_v57 }
  0x99   :  { %505 = vrot.lane.b32.xlu0 %v497_v55, %s2838_s19  ;;  %582 = vrot.lane.b32.xlu1 %v575_v56, %s2837_s20  ;;  %v72_v44 = vadd.f32 %v68_v37, %v51_v33  ;;  %v753_v55 = vmul.f32 %v3152_v1, %v751_v43  ;;  %v155_v56 = vmul.f32 %v3152_v1, %v153_v45 }
  0x9b   :  { %v66_v62 = vpop.permute.xlu0 %65  ;;  %v3119_v63 = vpop.permute.xlu1 %84 }
  0x9c   :  { %v69_v28 = vsel %vm67_vm0, %v3111_v57, %v66_v62  ;;  %v154_v57 = vmul.f32 %v3146_v0, %v153_v45  ;;  %v774_v45 = vmul.f32 %v3162_v20, %v771_v24 }
  0x9d   :  { %584 = vrot.lane.b32.xlu0 %v576_v59, %s2837_s20  ;;  %501 = vrot.lane.b32.xlu1 %v495_v60, %s2838_s19  ;;  %v73_v34 = vadd.f32 %v69_v28, %v52_v25 }
  0x9f   :  { %v87_v6 = vpop.permute.xlu0 %86  ;;  %v3125_v7 = vpop.permute.xlu1 %166 }
  0xa0   :  { %v90_v31 = vsel %vm88_vm1, %v3119_v63, %v87_v6  ;;  %v673_v6 = vmul.f32 %v3146_v0, %v672_v32 }
  0xa1   :  { %580 = vrot.lane.b32.xlu0 %v574_v2, %s2837_s20  ;;  %523 = vrot.lane.b32.xlu1 %v516_v4, %s2839_s15  ;;  %v94_v39 = vadd.f32 %v90_v31, %v73_v34  ;;  %v237_v34 = vstv %s3212_s22 }
  0xa3   :  { %v3131_v10 = vpop.permute.xlu0 %168  ;;  %v83_v11 = vpop.permute.xlu1 %82 }
  0xa4   :  { %v89_v42 = vsel %vm88_vm1, %v83_v11, %v3119_v63  ;;  %v171_v62 = vsel %vm67_vm0, %v3125_v7, %v3131_v10  ;;  %v692_v10 = vstv %s3191_s18  ;;  %s3538_s18 = sld [smem:[#allocation5 + $0x4]] }
  0xa5   :  { %525 = vrot.lane.b32.xlu0 %v517_v8, %s2839_s15  ;;  %602 = vrot.lane.b32.xlu1 %v595_v9, %s2838_s19  ;;  %v93_v53 = vadd.f32 %v89_v42, %v72_v44  ;;  %v175_v11 = vadd.f32 %v171_v62, %v155_v56  ;;  %v694_v23 = vmul.f32 %v3152_v1, %v692_v10  ;;  %v2709_v44 = vld [vmem:[%s3747_s3 + $0x168] sm:$0xff]   ;;  %v2713_v56 = vld [vmem:[%s3747_s3 + $0x160] sm:$0xff]  }
  0xa6   :  { %v695_v33 = vmul.f32 %v3162_v20, %v692_v10 }
  0xa7   :  { %v3139_v15 = vpop.permute.xlu0 %164  ;;  %v106_v16 = vpop.permute.xlu1 %105 }
  0xa8   :  { %v170_v63 = vsel %vm67_vm0, %v3139_v15, %v3125_v7 }
  0xa9   :  { %604 = vrot.lane.b32.xlu0 %v596_v12, %s2838_s19  ;;  %521 = vrot.lane.b32.xlu1 %v515_v13, %s2839_s15  ;;  %v174_v12 = vadd.f32 %v170_v63, %v154_v57  ;;  %v772_v57 = vmul.f32 %v3146_v0, %v771_v24  ;;  %v2714_v63 = vld [vmem:[%s3747_s3 + $0x120] sm:$0xff]  }
  0xab   :  { %v108_v18 = vpop.permute.xlu0 %107  ;;  %v3155_v19 = vpop.permute.xlu1 %186 }
  0xac   :  { %v111_v38 = vsel %vm109_vm2, %v106_v16, %v108_v18  ;;  %v752_v18 = vmul.f32 %v3146_v0, %v751_v43  ;;  %v2708_v43 = vld [vmem:[%s3747_s3 + $0x130] sm:$0xff]  }
  0xad   :  { %600 = vrot.lane.b32.xlu0 %v594_v17, %s2838_s19  ;;  %622 = vrot.lane.b32.xlu1 %v615_v3, %s2839_s15  ;;  %v115_v46 = vadd.f32 %v111_v38, %v94_v39  ;;  %v773_v38 = vmul.f32 %v3152_v1, %v771_v24  ;;  %v2727_v24 = vld [vmem:[%s3747_s3 + $0x1d8] sm:$0xff]  }
  0xaf   :  { %v189_v26 = vpop.permute.xlu0 %188  ;;  %v104_v27 = vpop.permute.xlu1 %103 }
  0xb0   :  { %v110_v49 = vsel %vm109_vm2, %v104_v27, %v106_v16  ;;  %v191_v9 = vsel %vm88_vm1, %v3155_v19, %v189_v26 }
  0xb1   :  { %624 = vrot.lane.b32.xlu0 %v616_v21, %s2839_s15  ;;  %620 = vrot.lane.b32.xlu1 %v614_v22, %s2839_s15  ;;  %v114_v58 = vadd.f32 %v110_v49, %v93_v53  ;;  %v195_v21 = vadd.f32 %v191_v9, %v175_v11  ;;  %v712_v49 = vstv %s3230_s23  ;;  %v2720_v11 = vld [vmem:[%s3747_s3 + $0x1a8] sm:$0xff]  }
  0xb3   :  { %v185_v35 = vpop.permute.xlu0 %184  ;;  %v127_v36 = vpop.permute.xlu1 %126 }
  0xb4   :  { %v190_v7 = vsel %vm88_vm1, %v185_v35, %v3155_v19  ;;  %v2707_v35 = vld [vmem:[%s3747_s3 + $0x170] sm:$0xff]  }
  0xb5   :  { %661 = vrot.lane.b32.xlu0 %v654_v29, %s2836_s14  ;;  %663 = vrot.lane.b32.xlu1 %v655_v30, %s2836_s14  ;;  %v194_v22 = vadd.f32 %v190_v7, %v174_v12  ;;  %v2706_v30 = vld [vmem:[%s3747_s3 + $0x138] sm:$0xff]   ;;  %v2721_v12 = vld [vmem:[%s3747_s3 + $0x150] sm:$0xff]  }
  0xb7   :  { %v129_v47 = vpop.permute.xlu0 %128  ;;  %v207_v48 = vpop.permute.xlu1 %206 }
  0xb8   :  { %v132_v50 = vsel %vm130_vm3, %v127_v36, %v129_v47 }
  0xb9   :  { %v136_v54 = vadd.f32 %v132_v50, %v115_v46  ;;  %659 = vrot.lane.b32.xlu0 %v653_v40, %s2836_s14  ;;  %681 = vrot.lane.b32.xlu1 %v674_v41, %s2837_s20  ;;  %v693_v46 = vmul.f32 %v3146_v0, %v692_v10  ;;  %v2718_v10 = vld [vmem:[%s3747_s3 + $0x118] sm:$0xff]  }
  0xbb   :  { %v209_v59 = vpop.permute.xlu0 %208  ;;  %v125_v60 = vpop.permute.xlu1 %124  ;;  %v140_v61 = vadd.f32 %v138_v52, %v136_v54  ;;  %v2710_v54 = vld [vmem:[%s3747_s3 + $0x128] sm:$0xff]  }
  0xbc   :  { %v131_v2 = vsel %vm130_vm3, %v125_v60, %v127_v36  ;;  %v211_v17 = vsel %vm109_vm2, %v207_v48, %v209_v59  ;;  %v791_v59 = vstv %s2318_s1  ;;  %v2715_v60 = vld [vmem:[%s3747_s3 + $0x1f0] sm:$0xff]  }
  0xbd   :  { %v135_v4 = vadd.f32 %v131_v2, %v114_v58  ;;  %683 = vrot.lane.b32.xlu0 %v675_v51, %s2837_s20  ;;  %760 = vrot.lane.b32.xlu1 %v753_v55, %s2836_s14  ;;  %v142_v8 = vmax.f32 %v140_v61, 0.0  ;;  %v215_v25 = vadd.f32 %v211_v17, %v195_v21  ;;  %v2712_v55 = vld [vmem:[%s3747_s3 + $0x1b8] sm:$0xff]   ;;  %v714_v58 = vmul.f32 %v3152_v1, %v712_v49  ;;  %v2716_v2 = vld [vmem:[%s3747_s3 + $0x1b0] sm:$0xff]  }
  0xbe   :  { %v2724_v21 = vld [vmem:[%s3747_s3 + $0x1a0] sm:$0xff]  }
  0xbf   :  { %v205_v13 = vpop.permute.xlu0 %204  ;;  %v227_v14 = vpop.permute.xlu1 %226  ;;  %v139_v15 = vadd.f32 %v138_v52, %v135_v4  ;;  %v2476_v16 = vpack.c.bf16 %v142_v8, %v142_v8  ;;  %v2717_v4 = vld [vmem:[%s3747_s3 + $0x158] sm:$0xff]   ;;  %v2719_v8 = vld [vmem:[%s3747_s3 + $0x1e8] sm:$0xff]  }
  0xc0   :  { %v210_v3 = vsel %vm109_vm2, %v205_v13, %v207_v48  ;;  %v794_v13 = vmul.f32 %v3162_v20, %v791_v59 }
  0xc1   :  { %762 = vrot.lane.b32.xlu0 %v754_v5, %s2836_s14  ;;  %679 = vrot.lane.b32.xlu1 %v673_v6, %s2837_s20  ;;  %v141_v19 = vmax.f32 %v139_v15, 0.0  ;;  %v214_v26 = vadd.f32 %v210_v3, %v194_v22  ;;  %v715_v5 = vmul.f32 %v3162_v20, %v712_v49  ;;  %v793_v6 = vmul.f32 %v3152_v1, %v791_v59  ;;  %v2725_v22 = vld [vmem:[%s3747_s3 + $0x148] sm:$0xff]  }
  0xc2   :  { %1972 = vmatprep.mubr.bf16.mxu0 %v2476_v16  ;;  %v811_v15 = vstv %s2319_s11  ;;  %v2723_v16 = vld [vmem:[%s3747_s3 + $0x1e0] sm:$0xff]   ;;  %s3527_s11 = sld [smem:[#allocation3 + $0x280]] }
  0xc3   :  { %v229_v27 = vpop.permute.xlu0 %228  ;;  %v225_v28 = vpop.permute.xlu1 %224  ;;  %v2475_v29 = vpack.c.bf16 %v141_v19, %v141_v19  ;;  %v792_v19 = vmul.f32 %v3146_v0, %v791_v59 }
  0xc4   :  { %v231_v31 = vsel %vm130_vm3, %v227_v14, %v229_v27  ;;  %v230_v32 = vsel %vm130_vm3, %v225_v28, %v227_v14  ;;  %v713_v14 = vmul.f32 %v3146_v0, %v712_v49  ;;  %v2726_v27 = vld [vmem:[%s3747_s3 + $0x108] sm:$0xff]  }
  0xc5   :  { %v235_v36 = vadd.f32 %v231_v31, %v215_v25  ;;  %v234_v37 = vadd.f32 %v230_v32, %v214_v26  ;;  %758 = vrot.lane.b32.xlu0 %v752_v18, %s2836_s14  ;;  %701 = vrot.lane.b32.xlu1 %v694_v23, %s2838_s19  ;;  %v2722_v18 = vld [vmem:[%s3747_s3 + $0x110] sm:$0xff]   ;;  %v813_v23 = vmul.f32 %v3152_v1, %v811_v15  ;;  %v2734_v49 = vld [vmem:[%s3747_s3 + $0x188] sm:$0xff]  }
  0xc6   :  { %1973 = vmatmul.mubr.bf16.vlgmr.msra.gmra.mxu0 %v2475_v29  ;;  %v2728_v29 = vld [vmem:[%s3747_s3 + $0x198] sm:$0xff]   ;;  %v814_v31 = vmul.f32 %v3162_v20, %v811_v15  ;;  %v812_v32 = vmul.f32 %v3146_v0, %v811_v15 }
  0xc7   :  { %v3245_v39 = vpop.permute.xlu0 %265  ;;  %v3247_v40 = vpop.permute.xlu1 %267  ;;  %v238_v41 = vadd.f32 %v237_v34, %v234_v37  ;;  %v239_v42 = vadd.f32 %v237_v34, %v235_v36  ;;  %2536 = vmatpush3.bf16.msra.mxu0 %v2706_v30  ;;  %v2729_v30 = vld [vmem:[%s3747_s3 + $0x140] sm:$0xff]  }
  0xc8   :  { %2537 = vmatprep.subr.bf16.mxu0 %v2707_v35  ;;  %v2730_v37 = vld [vmem:[%s3747_s3 + $0x100] sm:$0xff]   ;;  %v270_v20 = vsel %vm67_vm0, %v3245_v39, %v3247_v40  ;;  %v2733_v40 = vld [vmem:[%s3747_s3 + $0x1c8] sm:$0xff]  }
  0xc9   :  { %703 = vrot.lane.b32.xlu0 %v695_v33, %s2838_s19  ;;  %780 = vrot.lane.b32.xlu1 %v773_v38, %s2837_s20  ;;  %v240_v47 = vmax.f32 %v238_v41, 0.0  ;;  %v241_v48 = vmax.f32 %v239_v42, 0.0  ;;  %v2731_v33 = vld [vmem:[%s3747_s3 + $0x1d0] sm:$0xff]   ;;  %v2737_v41 = vld [vmem:[%s3747_s3 + $0x278] sm:$0xff]  }
  0xca   :  { %v2732_v38 = vld [vmem:[%s3747_s3 + $0x190] sm:$0xff]  }
  0xcb   :  { %v3260_v50 = vpop.permute.xlu0 %263  ;;  %v3262_v51 = vpop.permute.xlu1 %285  ;;  %v2478_v52 = vpack.c.bf16 %v241_v48, %v241_v48  ;;  %v2477_v53 = vpack.c.bf16 %v240_v47, %v240_v47  ;;  %2538 = vmatpush3.bf16.msra.mxu0 %v2708_v43 }
  0xcc   :  { %2539 = vmatprep.subr.bf16.mxu0 %v2709_v44  ;;  %v269_v47 = vsel %vm67_vm0, %v3260_v50, %v3245_v39 }
  0xcd   :  { %782 = vrot.lane.b32.xlu0 %v774_v45, %s2837_s20  ;;  %699 = vrot.lane.b32.xlu1 %v693_v46, %s2838_s19 }
  0xce   :  { %2012 = vmatprep.mubr.bf16.mxu1 %v2478_v52 }
  0xcf   :  { %2013 = vmatmul.mubr.bf16.vlgmr.msra.gmra.mxu1 %v2477_v53  ;;  %v3280_v61 = vpop.permute.xlu0 %287  ;;  %v3282_v62 = vpop.permute.xlu1 %364  ;;  %2540 = vmatpush3.bf16.msra.mxu0 %v2710_v54  ;;  %v2735_v53 = vld [vmem:[%s3747_s3 + $0x1c0] sm:$0xff]  }
  0xd0   :  { %2558 = vmatpush3.bf16.msra.mxu1 %v2712_v55  ;;  %2541 = vmatprep.subr.bf16.mxu0 %v2713_v56  ;;  %v290_v42 = vsel %vm88_vm1, %v3262_v51, %v3280_v61  ;;  %v2736_v61 = vld [vmem:[%s3747_s3 + $0x180] sm:$0xff]  }
  0xd1   :  { %778 = vrot.lane.b32.xlu0 %v772_v57, %s2837_s20  ;;  %721 = vrot.lane.b32.xlu1 %v714_v58, %s2839_s15  ;;  %s3307_s20 = sld [smem:[#allocation3 + $0x100]]  ;;  %v351_v57 = vstv %s3362_s26 }
  0xd2   :  { %2559 = vmatprep.subr.bf16.mxu1 %v2715_v60 }
  0xd3   :  { %v3300_v9 = vpop.permute.xlu0 %366  ;;  %v3302_v7 = vpop.permute.xlu1 %283  ;;  %2542 = vmatpush3.bf16.msra.mxu0 %v2714_v63 }
  0xd4   :  { %2560 = vmatpush3.bf16.msra.mxu1 %v2716_v2  ;;  %2543 = vmatprep.subr.bf16.mxu0 %v2717_v4  ;;  %v289_v54 = vsel %vm88_vm1, %v3302_v7, %v3262_v51  ;;  %v2743_v51 = vld [vmem:[%s3747_s3 + $0x2f8] sm:$0xff]   ;;  %v353_v4 = vmul.f32 %v3152_v1, %v351_v57 }
  0xd5   :  { %723 = vrot.lane.b32.xlu0 %v715_v5, %s2839_s15  ;;  %800 = vrot.lane.b32.xlu1 %v793_v6, %s2838_s19  ;;  %v352_v5 = vmul.f32 %v3146_v0, %v351_v57 }
  0xd6   :  { %2561 = vmatprep.subr.bf16.mxu1 %v2719_v8 }
  0xd7   :  { %v3322_v17 = vpop.permute.xlu0 %362  ;;  %v3324_v3 = vpop.permute.xlu1 %305  ;;  %2544 = vmatpush3.bf16.msra.mxu0 %v2718_v10  ;;  %v252_v28 = vstv %s3307_s20  ;;  %s3370_s20 = sld [smem:[#allocation5 + $0x2]] }
  0xd8   :  { %2562 = vmatpush3.bf16.msra.mxu1 %v2720_v11  ;;  %2545 = vmatprep.subr.bf16.mxu0 %v2721_v12  ;;  %v254_v34 = vmul.f32 %v3152_v1, %v252_v28  ;;  %v253_v44 = vmul.f32 %v3146_v0, %v252_v28  ;;  %v369_v11 = vsel %vm67_vm0, %v3282_v62, %v3300_v9  ;;  %v2738_v28 = vld [vmem:[%s3747_s3 + $0x238] sm:$0xff]  }
  0xd9   :  { %802 = vrot.lane.b32.xlu0 %v794_v13, %s2838_s19  ;;  %719 = vrot.lane.b32.xlu1 %v713_v14, %s2839_s15  ;;  %v368_v12 = vsel %vm67_vm0, %v3322_v17, %v3282_v62 }
  0xda   :  { %2563 = vmatprep.subr.bf16.mxu1 %v2723_v16  ;;  %v274_v43 = vadd.f32 %v270_v20, %v254_v34  ;;  %v273_v39 = vadd.f32 %v269_v47, %v253_v44  ;;  %v372_v9 = vadd.f32 %v368_v12, %v352_v5  ;;  %v435_v34 = vstv %s3421_s13  ;;  %v2741_v44 = vld [vmem:[%s3747_s3 + $0x268] sm:$0xff]   ;;  %v2755_v5 = vld [vmem:[%s3747_s3 + $0x2e0] sm:$0xff]   ;;  %v2759_v12 = vld [vmem:[%s3747_s3 + $0x2d8] sm:$0xff]  }
  0xdb   :  { %v308_v25 = vpop.permute.xlu0 %307  ;;  %v3342_v26 = vpop.permute.xlu1 %384  ;;  %2546 = vmatpush3.bf16.msra.mxu0 %v2722_v18  ;;  %v373_v18 = vadd.f32 %v369_v11, %v353_v4  ;;  %v2742_v47 = vld [vmem:[%s3747_s3 + $0x228] sm:$0xff]   ;;  %v2753_v4 = vld [vmem:[%s3747_s3 + $0x250] sm:$0xff]  }
  0xdc   :  { %2564 = vmatpush3.bf16.msra.mxu1 %v2724_v21  ;;  %2547 = vmatprep.subr.bf16.mxu0 %v2725_v22  ;;  %v310_v48 = vsel %vm109_vm2, %v3324_v3, %v308_v25  ;;  %v294_v52 = vadd.f32 %v290_v42, %v274_v43  ;;  %v293_v63 = vadd.f32 %v289_v54, %v273_v39  ;;  %v2744_v54 = vld [vmem:[%s3747_s3 + $0x2b8] sm:$0xff]   ;;  %v2745_v39 = vld [vmem:[%s3747_s3 + $0x260] sm:$0xff]   ;;  %v2757_v11 = vld [vmem:[%s3747_s3 + $0x248] sm:$0xff]  }
  0xdd   :  { %798 = vrot.lane.b32.xlu0 %v792_v19, %s2838_s19  ;;  %820 = vrot.lane.b32.xlu1 %v813_v23, %s2839_s15  ;;  %v336_v59 = vstv %s3370_s20  ;;  %s3683_s20 = sld [smem:[#allocation3 + $0x380]] }
  0xde   :  { %2565 = vmatprep.subr.bf16.mxu1 %v2727_v24  ;;  %v314_v50 = vadd.f32 %v310_v48, %v294_v52 }
  0xdf   :  { %v387_v35 = vpop.permute.xlu0 %386  ;;  %v304_v36 = vpop.permute.xlu1 %303  ;;  %2548 = vmatpush3.bf16.msra.mxu0 %v2726_v27 }
  0xe0   :  { %2566 = vmatpush3.bf16.msra.mxu1 %v2728_v29  ;;  %2549 = vmatprep.subr.bf16.mxu0 %v2729_v30  ;;  %v309_v58 = vsel %vm109_vm2, %v304_v36, %v3324_v3  ;;  %v389_v16 = vsel %vm88_vm1, %v3342_v26, %v387_v35 }
  0xe1   :  { %822 = vrot.lane.b32.xlu0 %v814_v31, %s2839_s15  ;;  %818 = vrot.lane.b32.xlu1 %v812_v32, %s2839_s15  ;;  %v313_v6 = vadd.f32 %v309_v58, %v293_v63  ;;  %v393_v24 = vadd.f32 %v389_v16, %v373_v18  ;;  %v2748_v58 = vld [vmem:[%s3747_s3 + $0x2b0] sm:$0xff]   ;;  %v2760_v16 = vld [vmem:[%s3747_s3 + $0x298] sm:$0xff]  }
  0xe2   :  { %2567 = vmatprep.subr.bf16.mxu1 %v2731_v33  ;;  %v2739_v33 = vld [vmem:[%s3747_s3 + $0x270] sm:$0xff]   ;;  %v450_v18 = vstv %s3489_s21 }
  0xe3   :  { %v383_v45 = vpop.permute.xlu0 %382  ;;  %v326_v46 = vpop.permute.xlu1 %325  ;;  %2550 = vmatpush3.bf16.msra.mxu0 %v2730_v37 }
  0xe4   :  { %2568 = vmatpush3.bf16.msra.mxu1 %v2732_v38  ;;  %2579 = vmatprep.subr.bf16.mxu0 %v2737_v41  ;;  %v388_v3 = vsel %vm88_vm1, %v383_v45, %v3342_v26  ;;  %v2740_v38 = vld [vmem:[%s3747_s3 + $0x230] sm:$0xff]  }
  0xe5   :  { %2569 = vmatprep.subr.bf16.mxu1 %v2733_v40  ;;  %v392_v25 = vadd.f32 %v388_v3, %v372_v9  ;;  %v2761_v3 = vld [vmem:[%s3747_s3 + $0x240] sm:$0xff]   ;;  %v2763_v9 = vld [vmem:[%s3747_s3 + $0x2d0] sm:$0xff]  }
  0xe7   :  { %v328_v55 = vpop.permute.xlu0 %327  ;;  %v405_v56 = vpop.permute.xlu1 %404 }
  0xe8   :  { %v330_v60 = vsel %vm130_vm3, %v326_v46, %v328_v55  ;;  %2570 = vmatpush3.bf16.msra.mxu1 %v2734_v49  ;;  %v2746_v55 = vld [vmem:[%s3747_s3 + $0x220] sm:$0xff]  }
  0xe9   :  { %v334_v2 = vadd.f32 %v330_v60, %v314_v50  ;;  %2571 = vmatprep.subr.bf16.mxu1 %v2735_v53  ;;  %v2747_v50 = vld [vmem:[%s3747_s3 + $0x2f0] sm:$0xff]   ;;  %v2751_v60 = vld [vmem:[%s3747_s3 + $0x2e8] sm:$0xff]  }
  0xeb   :  { %v338_v8 = vadd.f32 %v336_v59, %v334_v2  ;;  %v407_v7 = vpop.permute.xlu0 %406  ;;  %v324_v10 = vpop.permute.xlu1 %323 }
  0xec   :  { %v329_v13 = vsel %vm130_vm3, %v324_v10, %v326_v46  ;;  %2572 = vmatpush3.bf16.msra.mxu1 %v2736_v61  ;;  %v409_v19 = vsel %vm109_vm2, %v405_v56, %v407_v7  ;;  %v2750_v61 = vld [vmem:[%s3747_s3 + $0x218] sm:$0xff]   ;;  %v2756_v10 = vld [vmem:[%s3747_s3 + $0x2a0] sm:$0xff]  }
  0xed   :  { %v333_v14 = vadd.f32 %v329_v13, %v313_v6  ;;  %v340_v15 = vmax.f32 %v338_v8, 0.0  ;;  %2601 = vmatprep.subr.bf16.mxu1 %v2743_v51  ;;  %v413_v26 = vadd.f32 %v409_v19, %v393_v24  ;;  %v2752_v51 = vld [vmem:[%s3747_s3 + $0x2a8] sm:$0xff]   ;;  %v2754_v6 = vld [vmem:[%s3747_s3 + $0x210] sm:$0xff]  }
  0xee   :  { %v2758_v13 = vld [vmem:[%s3747_s3 + $0x208] sm:$0xff]   ;;  %v2764_v19 = vld [vmem:[%s3747_s3 + $0x290] sm:$0xff]  }
  0xef   :  { %v337_v21 = vadd.f32 %v336_v59, %v333_v14  ;;  %v403_v22 = vpop.permute.xlu0 %402  ;;  %v425_v62 = vpop.permute.xlu1 %424  ;;  %v2480_v17 = vpack.c.bf16 %v340_v15, %v340_v15  ;;  %v2749_v59 = vld [vmem:[%s3747_s3 + $0x258] sm:$0xff]  }
  0xf0   :  { %v408_v23 = vsel %vm109_vm2, %v403_v22, %v405_v56  ;;  %v452_v22 = vmul.f32 %v3152_v1, %v450_v18 }
  0xf1   :  { %v339_v27 = vmax.f32 %v337_v21, 0.0  ;;  %2052 = vmatprep.mubr.bf16.mxu0 %v2480_v17  ;;  %v412_v30 = vadd.f32 %v408_v23, %v392_v25  ;;  %v2762_v21 = vld [vmem:[%s3747_s3 + $0x200] sm:$0xff]   ;;  %v2769_v23 = vld [vmem:[%s3747_s3 + $0x378] sm:$0xff]   ;;  %v2765_v25 = vld [vmem:[%s3747_s3 + $0x2c8] sm:$0xff]  }
  0xf3   :  { %v2479_v29 = vpack.c.bf16 %v339_v27, %v339_v27  ;;  %v427_v31 = vpop.permute.xlu0 %426  ;;  %v423_v32 = vpop.permute.xlu1 %422 }
  0xf4   :  { %v429_v35 = vsel %vm130_vm3, %v425_v62, %v427_v31  ;;  %v428_v36 = vsel %vm130_vm3, %v423_v32, %v425_v62  ;;  %v2766_v31 = vld [vmem:[%s3747_s3 + $0x288] sm:$0xff]  }
  0xf5   :  { %v433_v37 = vadd.f32 %v429_v35, %v413_v26  ;;  %v432_v20 = vadd.f32 %v428_v36, %v412_v30  ;;  %2053 = vmatmul.mubr.bf16.vlgmr.msra.gmra.mxu0 %v2479_v29  ;;  %v451_v26 = vmul.f32 %v3146_v0, %v450_v18  ;;  %v2771_v18 = vld [vmem:[%s3747_s3 + $0x370] sm:$0xff]  }
  0xf6   :  { %2580 = vmatpush3.bf16.msra.mxu0 %v2738_v28 }
  0xf7   :  { %v437_v41 = vadd.f32 %v435_v34, %v433_v37  ;;  %v436_v40 = vadd.f32 %v435_v34, %v432_v20  ;;  %v3441_v42 = vpop.permute.xlu0 %463  ;;  %v3443_v43 = vpop.permute.xlu1 %465  ;;  %2581 = vmatprep.subr.bf16.mxu0 %v2739_v33  ;;  %v2767_v34 = vld [vmem:[%s3747_s3 + $0x2c0] sm:$0xff]  }
  0xf8   :  { %v468_v24 = vsel %vm67_vm0, %v3441_v42, %v3443_v43 }
  0xf9   :  { %v438_v45 = vmax.f32 %v436_v40, 0.0  ;;  %v439_v46 = vmax.f32 %v437_v41, 0.0  ;;  %v472_v28 = vadd.f32 %v468_v24, %v452_v22  ;;  %v2768_v40 = vld [vmem:[%s3747_s3 + $0x280] sm:$0xff]  }
  0xfa   :  { %2582 = vmatpush3.bf16.msra.mxu0 %v2740_v38 }
  0xfb   :  { %v2481_v48 = vpack.c.bf16 %v438_v45, %v438_v45  ;;  %v3451_v49 = vpop.permute.xlu0 %461  ;;  %v3453_v52 = vpop.permute.xlu1 %483  ;;  %v2482_v53 = vpack.c.bf16 %v439_v46, %v439_v46  ;;  %2583 = vmatprep.subr.bf16.mxu0 %v2741_v44  ;;  %v534_v44 = vstv %s3538_s18  ;;  %v2775_v46 = vld [vmem:[%s3747_s3 + $0x3f8] sm:$0xff]  }
  0xfc   :  { %v467_v32 = vsel %vm67_vm0, %v3451_v49, %v3441_v42  ;;  %v549_v42 = vstv %s3527_s11 }
  0xfd   :  { %2092 = vmatprep.mubr.bf16.mxu1 %v2482_v53  ;;  %v471_v37 = vadd.f32 %v467_v32, %v451_v26  ;;  %v551_v49 = vmul.f32 %v3152_v1, %v549_v42 }
  0xfe   :  { %2093 = vmatmul.mubr.bf16.vlgmr.msra.gmra.mxu1 %v2481_v48  ;;  %2584 = vmatpush3.bf16.msra.mxu0 %v2742_v47 }
  0xff   :  { %v486_v56 = vpop.permute.xlu0 %485  ;;  %v3467_v57 = vpop.permute.xlu1 %562  ;;  %2602 = vmatpush3.bf16.msra.mxu1 %v2744_v54  ;;  %2585 = vmatprep.subr.bf16.mxu0 %v2745_v39 }
 0x100   :  { %2603 = vmatprep.subr.bf16.mxu1 %v2747_v50  ;;  %v488_v27 = vsel %vm88_vm1, %v3453_v52, %v486_v56 }
 0x101   :  { %v492_v35 = vadd.f32 %v488_v27, %v472_v28  ;;  %v2773_v28 = vld [vmem:[%s3747_s3 + $0x368] sm:$0xff]  }
 0x102   :  { %2586 = vmatpush3.bf16.msra.mxu0 %v2746_v55 }
 0x103   :  { %v3481_v63 = vpop.permute.xlu0 %564  ;;  %v482_v2 = vpop.permute.xlu1 %481  ;;  %2604 = vmatpush3.bf16.msra.mxu1 %v2748_v58  ;;  %2587 = vmatprep.subr.bf16.mxu0 %v2749_v59 }
 0x104   :  { %2605 = vmatprep.subr.bf16.mxu1 %v2751_v60  ;;  %v487_v36 = vsel %vm88_vm1, %v482_v2, %v3453_v52  ;;  %v550_v52 = vmul.f32 %v3146_v0, %v549_v42  ;;  %v567_v55 = vsel %vm67_vm0, %v3467_v57, %v3481_v63  ;;  %v2781_v42 = vld [vmem:[%s3747_s3 + $0x358] sm:$0xff]  }
 0x105   :  { %v491_v47 = vadd.f32 %v487_v36, %v471_v37  ;;  %v571_v2 = vadd.f32 %v567_v55, %v551_v49  ;;  %v2777_v36 = vld [vmem:[%s3747_s3 + $0x360] sm:$0xff]   ;;  %v2779_v37 = vld [vmem:[%s3747_s3 + $0x3f0] sm:$0xff]   ;;  %v2791_v55 = vld [vmem:[%s3747_s3 + $0x3d8] sm:$0xff]  }
 0x106   :  { %2588 = vmatpush3.bf16.msra.mxu0 %v2750_v61  ;;  %v2787_v49 = vld [vmem:[%s3747_s3 + $0x3e0] sm:$0xff]  }
 0x107   :  { %v3497_v8 = vpop.permute.xlu0 %560  ;;  %v504_v7 = vpop.permute.xlu1 %503  ;;  %2606 = vmatpush3.bf16.msra.mxu1 %v2752_v51  ;;  %2589 = vmatprep.subr.bf16.mxu0 %v2753_v4 }
 0x108   :  { %2607 = vmatprep.subr.bf16.mxu1 %v2755_v5  ;;  %v566_v56 = vsel %vm67_vm0, %v3497_v8, %v3467_v57 }
 0x109   :  { %v570_v51 = vadd.f32 %v566_v56, %v550_v52  ;;  %v2786_v52 = vld [vmem:[%s3747_s3 + $0x310] sm:$0xff]   ;;  %v2790_v56 = vld [vmem:[%s3747_s3 + $0x308] sm:$0xff]  }
 0x10a   :  { %2590 = vmatpush3.bf16.msra.mxu0 %v2754_v6 }
 0x10b   :  { %v506_v14 = vpop.permute.xlu0 %505  ;;  %v3511_v15 = vpop.permute.xlu1 %582  ;;  %2608 = vmatpush3.bf16.msra.mxu1 %v2756_v10  ;;  %2591 = vmatprep.subr.bf16.mxu0 %v2757_v11 }
 0x10c   :  { %2609 = vmatprep.subr.bf16.mxu1 %v2759_v12  ;;  %v508_v33 = vsel %vm109_vm2, %v504_v7, %v506_v14  ;;  %v2770_v12 = vld [vmem:[%s3747_s3 + $0x338] sm:$0xff]  }
 0x10d   :  { %v512_v20 = vadd.f32 %v508_v33, %v492_v35  ;;  %v2776_v35 = vld [vmem:[%s3747_s3 + $0x3b8] sm:$0xff]  }
 0x10e   :  { %2592 = vmatpush3.bf16.msra.mxu0 %v2758_v13 }
 0x10f   :  { %v585_v62 = vpop.permute.xlu0 %584  ;;  %v502_v17 = vpop.permute.xlu1 %501  ;;  %2610 = vmatpush3.bf16.msra.mxu1 %v2760_v16  ;;  %2593 = vmatprep.subr.bf16.mxu0 %v2761_v3 }
 0x110   :  { %2611 = vmatprep.subr.bf16.mxu1 %v2763_v9  ;;  %v507_v43 = vsel %vm109_vm2, %v502_v17, %v504_v7  ;;  %v587_v60 = vsel %vm88_vm1, %v3511_v15, %v585_v62  ;;  %v633_v9 = vstv %s3577_s27 }
 0x111   :  { %v511_v53 = vadd.f32 %v507_v43, %v491_v47  ;;  %v591_v7 = vadd.f32 %v587_v60, %v571_v2  ;;  %v2783_v43 = vld [vmem:[%s3747_s3 + $0x3e8] sm:$0xff]   ;;  %v2793_v60 = vld [vmem:[%s3747_s3 + $0x340] sm:$0xff]   ;;  %v2795_v2 = vld [vmem:[%s3747_s3 + $0x3d0] sm:$0xff]  }
 0x112   :  { %2594 = vmatpush3.bf16.msra.mxu0 %v2762_v21  ;;  %v2784_v47 = vld [vmem:[%s3747_s3 + $0x3a8] sm:$0xff]  }
 0x113   :  { %v581_v29 = vpop.permute.xlu0 %580  ;;  %v524_v30 = vpop.permute.xlu1 %523  ;;  %2612 = vmatpush3.bf16.msra.mxu1 %v2764_v19  ;;  %2623 = vmatprep.subr.bf16.mxu0 %v2769_v23  ;;  %v2772_v19 = vld [vmem:[%s3747_s3 + $0x330] sm:$0xff]  }
 0x114   :  { %2613 = vmatprep.subr.bf16.mxu1 %v2765_v25  ;;  %v586_v61 = vsel %vm88_vm1, %v581_v29, %v3511_v15 }
 0x115   :  { %v590_v10 = vadd.f32 %v586_v61, %v570_v51  ;;  %v648_v61 = vstv %s3645_s30  ;;  %v2794_v51 = vld [vmem:[%s3747_s3 + $0x300] sm:$0xff]  }
 0x117   :  { %v526_v38 = vpop.permute.xlu0 %525  ;;  %v603_v41 = vpop.permute.xlu1 %602  ;;  %2614 = vmatpush3.bf16.msra.mxu1 %v2766_v31 }
 0x118   :  { %v528_v45 = vsel %vm130_vm3, %v524_v30, %v526_v38  ;;  %2615 = vmatprep.subr.bf16.mxu1 %v2767_v34 }
 0x119   :  { %v532_v48 = vadd.f32 %v528_v45, %v512_v20  ;;  %v2778_v20 = vld [vmem:[%s3747_s3 + $0x320] sm:$0xff]  }
 0x11b   :  { %v536_v54 = vadd.f32 %v534_v44, %v532_v48  ;;  %v605_v39 = vpop.permute.xlu0 %604  ;;  %v522_v50 = vpop.permute.xlu1 %521  ;;  %2616 = vmatpush3.bf16.msra.mxu1 %v2768_v40  ;;  %v2780_v40 = vld [vmem:[%s3747_s3 + $0x3b0] sm:$0xff]  }
 0x11c   :  { %v527_v58 = vsel %vm130_vm3, %v522_v50, %v524_v30  ;;  %2645 = vmatprep.subr.bf16.mxu1 %v2775_v46  ;;  %v607_v6 = vsel %vm109_vm2, %v603_v41, %v605_v39  ;;  %v2774_v30 = vld [vmem:[%s3747_s3 + $0x328] sm:$0xff]   ;;  %v2785_v48 = vld [vmem:[%s3747_s3 + $0x350] sm:$0xff]   ;;  %v2788_v39 = vld [vmem:[%s3747_s3 + $0x3a0] sm:$0xff]  }
 0x11d   :  { %v531_v59 = vadd.f32 %v527_v58, %v511_v53  ;;  %v538_v0 = vmax.f32 %v536_v54, 0.0  ;;  %v611_v13 = vadd.f32 %v607_v6, %v591_v7  ;;  %v2789_v50 = vld [vmem:[%s3747_s3 + $0x348] sm:$0xff]  }
 0x11f   :  { %v535_v63 = vadd.f32 %v534_v44, %v531_v59  ;;  %v601_v4 = vpop.permute.xlu0 %600  ;;  %v623_v5 = vpop.permute.xlu1 %622  ;;  %v2484_v57 = vpack.c.bf16 %v538_v0, %v538_v0  ;;  %v2782_v44 = vld [vmem:[%s3747_s3 + $0x318] sm:$0xff]  }
 0x120   :  { %v606_v8 = vsel %vm109_vm2, %v601_v4, %v603_v41  ;;  %v2792_v0 = vld [vmem:[%s3747_s3 + $0x398] sm:$0xff]  }
 0x121   :  { %v537_v11 = vmax.f32 %v535_v63, 0.0  ;;  %2132 = vmatprep.mubr.bf16.mxu0 %v2484_v57  ;;  %v610_v15 = vadd.f32 %v606_v8, %v590_v10  ;;  %v650_v63 = vmul.f32 %v3152_v1, %v648_v61  ;;  %v2796_v57 = vld [vmem:[%s3747_s3 + $0x390] sm:$0xff]   ;;  %v2797_v1 = vld [vmem:[%s3747_s3 + $0x3c8] sm:$0xff]   ;;  %v2804_v10 = vld [vmem:[%s3746_s2] sm:$0xff] }
 0x123   :  { %v2483_v14 = vpack.c.bf16 %v537_v11, %v537_v11  ;;  %v625_v16 = vpop.permute.xlu0 %624  ;;  %v621_v3 = vpop.permute.xlu1 %620  ;;  %v649_v11 = vmul.f32 %v2804_v10, %v648_v61 }
 0x124   :  { %v627_v21 = vsel %vm130_vm3, %v623_v5, %v625_v16  ;;  %v626_v22 = vsel %vm130_vm3, %v621_v3, %v623_v5  ;;  %v2799_v3 = vld [vmem:[%s3747_s3 + $0x3c0] sm:$0xff]  }
 0x125   :  { %v631_v62 = vadd.f32 %v627_v21, %v611_v13  ;;  %v630_v17 = vadd.f32 %v626_v22, %v610_v15  ;;  %2133 = vmatmul.mubr.bf16.vlgmr.msra.gmra.mxu0 %v2483_v14  ;;  %v2798_v14 = vld [vmem:[%s3747_s3 + $0x388] sm:$0xff]  }
 0x126   :  { %2624 = vmatpush3.bf16.msra.mxu0 %v2770_v12 }
 0x127   :  { %v635_v23 = vadd.f32 %v633_v9, %v631_v62  ;;  %v634_v24 = vadd.f32 %v633_v9, %v630_v17  ;;  %v3597_v25 = vpop.permute.xlu0 %661  ;;  %v3599_v27 = vpop.permute.xlu1 %663  ;;  %2625 = vmatprep.subr.bf16.mxu0 %v2771_v18 }
 0x128   :  { %v666_v6 = vsel %vm67_vm0, %v3597_v25, %v3599_v27 }
 0x129   :  { %v636_v26 = vmax.f32 %v634_v24, 0.0  ;;  %v637_v29 = vmax.f32 %v635_v23, 0.0  ;;  %v670_v7 = vadd.f32 %v666_v6, %v650_v63  ;;  %v747_v23 = vstv %s3683_s20 }
 0x12a   :  { %2626 = vmatpush3.bf16.msra.mxu0 %v2772_v19  ;;  %v2800_v19 = vld [vmem:[%s3747_s3 + $0x380] sm:$0xff]   ;;  %s2320_s3 = sld [smem:[#allocation5 + $0x7]] }
 0x12b   :  { %v2485_v31 = vpack.c.bf16 %v636_v26, %v636_v26  ;;  %v3607_v32 = vpop.permute.xlu0 %659  ;;  %v3609_v33 = vpop.permute.xlu1 %681  ;;  %v2486_v34 = vpack.c.bf16 %v637_v29, %v637_v29  ;;  %2627 = vmatprep.subr.bf16.mxu0 %v2773_v28  ;;  %v2805_v29 = vld [vmem:[%s3746_s2 + $0x8] sm:$0xff] }
 0x12c   :  { %v665_v15 = vsel %vm67_vm0, %v3607_v32, %v3597_v25  ;;  %v732_v25 = vstv %s3691_s28 }
 0x12d   :  { %2172 = vmatprep.mubr.bf16.mxu1 %v2486_v34  ;;  %v669_v21 = vadd.f32 %v665_v15, %v649_v11 }
 0x12e   :  { %2173 = vmatmul.mubr.bf16.vlgmr.msra.gmra.mxu1 %v2485_v31  ;;  %2628 = vmatpush3.bf16.msra.mxu0 %v2774_v30  ;;  %v749_v30 = vmul.f32 %v2805_v29, %v747_v23  ;;  %v748_v31 = vmul.f32 %v2804_v10, %v747_v23 }
 0x12f   :  { %v684_v38 = vpop.permute.xlu0 %683  ;;  %v3623_v41 = vpop.permute.xlu1 %760  ;;  %2646 = vmatpush3.bf16.msra.mxu1 %v2776_v35  ;;  %2629 = vmatprep.subr.bf16.mxu0 %v2777_v36 }
 0x130   :  { %2647 = vmatprep.subr.bf16.mxu1 %v2779_v37  ;;  %v686_v8 = vsel %vm88_vm1, %v3609_v33, %v684_v38 }
 0x131   :  { %v690_v18 = vadd.f32 %v686_v8, %v670_v7 }
 0x132   :  { %2630 = vmatpush3.bf16.msra.mxu0 %v2778_v20 }
 0x133   :  { %v3637_v45 = vpop.permute.xlu0 %762  ;;  %v680_v46 = vpop.permute.xlu1 %679  ;;  %2648 = vmatpush3.bf16.msra.mxu1 %v2780_v40  ;;  %2631 = vmatprep.subr.bf16.mxu0 %v2781_v42 }
 0x134   :  { %2649 = vmatprep.subr.bf16.mxu1 %v2783_v43  ;;  %v685_v9 = vsel %vm88_vm1, %v680_v46, %v3609_v33  ;;  %v765_v36 = vsel %vm67_vm0, %v3623_v41, %v3637_v45 }
 0x135   :  { %v689_v28 = vadd.f32 %v685_v9, %v669_v21 }
 0x136   :  { %2632 = vmatpush3.bf16.msra.mxu0 %v2782_v44  ;;  %v769_v44 = vadd.f32 %v765_v36, %v749_v30 }
 0x137   :  { %v3653_v53 = vpop.permute.xlu0 %758  ;;  %v702_v54 = vpop.permute.xlu1 %701  ;;  %2650 = vmatpush3.bf16.msra.mxu1 %v2784_v47  ;;  %2633 = vmatprep.subr.bf16.mxu0 %v2785_v48 }
 0x138   :  { %2651 = vmatprep.subr.bf16.mxu1 %v2787_v49  ;;  %v764_v37 = vsel %vm67_vm0, %v3653_v53, %v3623_v41 }
 0x139   :  { %v768_v46 = vadd.f32 %v764_v37, %v748_v31 }
 0x13a   :  { %2634 = vmatpush3.bf16.msra.mxu0 %v2786_v52 }
 0x13b   :  { %v704_v58 = vpop.permute.xlu0 %703  ;;  %v3667_v59 = vpop.permute.xlu1 %780  ;;  %2652 = vmatpush3.bf16.msra.mxu1 %v2788_v39  ;;  %2635 = vmatprep.subr.bf16.mxu0 %v2789_v50 }
 0x13c   :  { %2653 = vmatprep.subr.bf16.mxu1 %v2791_v55  ;;  %v706_v16 = vsel %vm109_vm2, %v702_v54, %v704_v58 }
 0x13d   :  { %v710_v22 = vadd.f32 %v706_v16, %v690_v18 }
 0x13e   :  { %2636 = vmatpush3.bf16.msra.mxu0 %v2790_v56 }
 0x13f   :  { %v783_v4 = vpop.permute.xlu0 %782  ;;  %v700_v5 = vpop.permute.xlu1 %699  ;;  %2654 = vmatpush3.bf16.msra.mxu1 %v2792_v0  ;;  %2637 = vmatprep.subr.bf16.mxu0 %v2793_v60 }
 0x140   :  { %2655 = vmatprep.subr.bf16.mxu1 %v2795_v2  ;;  %v705_v24 = vsel %vm109_vm2, %v700_v5, %v702_v54  ;;  %v785_v42 = vsel %vm88_vm1, %v3667_v59, %v783_v4 }
 0x141   :  { %v709_v32 = vadd.f32 %v705_v24, %v689_v28  ;;  %v789_v53 = vadd.f32 %v785_v42, %v769_v44 }
 0x142   :  { %2638 = vmatpush3.bf16.msra.mxu0 %v2794_v51 }
 0x143   :  { %v779_v12 = vpop.permute.xlu0 %778  ;;  %v722_v13 = vpop.permute.xlu1 %721  ;;  %2656 = vmatpush3.bf16.msra.mxu1 %v2796_v57 }
 0x144   :  { %2657 = vmatprep.subr.bf16.mxu1 %v2797_v1  ;;  %v784_v43 = vsel %vm88_vm1, %v779_v12, %v3667_v59  ;;  %v831_v59 = vstv %s2320_s3 }
 0x145   :  { %v788_v54 = vadd.f32 %v784_v43, %v768_v46 }
 0x147   :  { %v724_v62 = vpop.permute.xlu0 %723  ;;  %v801_v17 = vpop.permute.xlu1 %800  ;;  %2658 = vmatpush3.bf16.msra.mxu1 %v2798_v14 }
 0x148   :  { %v726_v27 = vsel %vm130_vm3, %v722_v13, %v724_v62  ;;  %2659 = vmatprep.subr.bf16.mxu1 %v2799_v3 }
 0x149   :  { %v730_v26 = vadd.f32 %v726_v27, %v710_v22 }
 0x14b   :  { %v734_v33 = vadd.f32 %v732_v25, %v730_v26  ;;  %v803_v34 = vpop.permute.xlu0 %802  ;;  %v720_v35 = vpop.permute.xlu1 %719  ;;  %2660 = vmatpush3.bf16.msra.mxu1 %v2800_v19 }
 0x14c   :  { %v725_v20 = vsel %vm130_vm3, %v720_v35, %v722_v13  ;;  %v805_v52 = vsel %vm109_vm2, %v801_v17, %v803_v34  ;;  %v2322_v13 = vld [vmem:[%s3748_s4] ss:$0 sm:$0xff] }
 0x14d   :  { %v729_v38 = vadd.f32 %v725_v20, %v709_v32  ;;  %v736_v40 = vmax.f32 %v734_v33, 0.0  ;;  %v809_v50 = vadd.f32 %v805_v52, %v789_v53 }
 0x14f   :  { %v733_v47 = vadd.f32 %v732_v25, %v729_v38  ;;  %v799_v48 = vpop.permute.xlu0 %798  ;;  %v821_v45 = vpop.permute.xlu1 %820  ;;  %v2488_v49 = vpack.c.bf16 %v736_v40, %v736_v40 }
 0x150   :  { %v804_v41 = vsel %vm109_vm2, %v799_v48, %v801_v17 }
 0x151   :  { %v735_v39 = vmax.f32 %v733_v47, 0.0  ;;  %2212 = vmatprep.mubr.bf16.mxu0 %v2488_v49  ;;  %v808_v56 = vadd.f32 %v804_v41, %v788_v54 }
 0x153   :  { %v2487_v55 = vpack.c.bf16 %v735_v39, %v735_v39  ;;  %v823_v58 = vpop.permute.xlu0 %822  ;;  %v819_v0 = vpop.permute.xlu1 %818 }
 0x154   :  { %v825_v60 = vsel %vm130_vm3, %v821_v45, %v823_v58  ;;  %v824_v61 = vsel %vm130_vm3, %v819_v0, %v821_v45 }
 0x155   :  { %v829_v2 = vadd.f32 %v825_v60, %v809_v50  ;;  %v828_v51 = vadd.f32 %v824_v61, %v808_v56  ;;  %2213 = vmatmul.mubr.bf16.vlgmr.msra.gmra.mxu0 %v2487_v55 }
 0x157   :  { %v833_v63 = vadd.f32 %v831_v59, %v829_v2  ;;  %v832_v4 = vadd.f32 %v831_v59, %v828_v51 }
 0x159   :  { %v834_v5 = vmax.f32 %v832_v4, 0.0  ;;  %v835_v57 = vmax.f32 %v833_v63, 0.0 }
 0x15b   :  { %v2489_v6 = vpack.c.bf16 %v834_v5, %v834_v5  ;;  %v2490_v1 = vpack.c.bf16 %v835_v57, %v835_v57 }
 0x15d   :  { %2252 = vmatprep.mubr.bf16.mxu1 %v2490_v1 }
 0x15e   :  { %2253 = vmatmul.mubr.bf16.vlgmr.msra.gmra.mxu1 %v2489_v6 }
 0x186   :  { %v2507_v8 = vpop.f32.mrf.mxu0 }
 0x188   :  { %v2508_v7 = vpop.f32.mrf.mxu0 }
 0x189   :  { %v2509_v10 = vadd.f32 %v2508_v7, %v2507_v8 }
 0x18a   :  { %v2510_v11 = vpop.f32.mrf.mxu0 }
 0x18b   :  { %v1975_v16 = vadd.f32 %v2509_v10, %v2322_v13 }
 0x18c   :  { %v2511_v12 = vpop.f32.mrf.mxu0 }
 0x18f   :  { %v2529_v14 = vpop.f32.mrf.mxu1 }
 0x191   :  { %v2530_v15 = vpop.f32.mrf.mxu1 }
 0x192   :  { %v2531_v3 = vadd.f32 %v2530_v15, %v2529_v14 }
 0x193   :  { %v2532_v18 = vpop.f32.mrf.mxu1 }
 0x194   :  { %v2015_v9 = vadd.f32 %v2531_v3, %v1975_v16 }
 0x195   :  { %v2533_v21 = vpop.f32.mrf.mxu1 }
 0x1b5   :  { %v2551_v22 = vpop.f32.mrf.mxu0 }
 0x1b7   :  { %v2552_v62 = vpop.f32.mrf.mxu0 }
 0x1b8   :  { %v2553_v17 = vadd.f32 %v2552_v62, %v2551_v22 }
 0x1b9   :  { %v2554_v19 = vpop.f32.mrf.mxu0 }
 0x1ba   :  { %v2055_v23 = vadd.f32 %v2553_v17, %v2015_v9 }
 0x1bb   :  { %v2555_v24 = vpop.f32.mrf.mxu0 }
 0x1be   :  { %v2573_v25 = vpop.f32.mrf.mxu1 }
 0x1c0   :  { %v2574_v27 = vpop.f32.mrf.mxu1 }
 0x1c1   :  { %v2575_v28 = vadd.f32 %v2574_v27, %v2573_v25 }
 0x1c2   :  { %v2576_v26 = vpop.f32.mrf.mxu1 }
 0x1c3   :  { %v2095_v29 = vadd.f32 %v2575_v28, %v2055_v23 }
 0x1c4   :  { %v2577_v30 = vpop.f32.mrf.mxu1 }
 0x1e5   :  { %v2595_v31 = vpop.f32.mrf.mxu0 }
 0x1e7   :  { %v2596_v32 = vpop.f32.mrf.mxu0 }
 0x1e8   :  { %v2597_v42 = vadd.f32 %v2596_v32, %v2595_v31 }
 0x1e9   :  { %v2598_v33 = vpop.f32.mrf.mxu0 }
 0x1ea   :  { %v2135_v47 = vadd.f32 %v2597_v42, %v2095_v29 }
 0x1eb   :  { %v2599_v34 = vpop.f32.mrf.mxu0 }
 0x1ee   :  { %v2617_v35 = vpop.f32.mrf.mxu1 }
 0x1f0   :  { %v2618_v36 = vpop.f32.mrf.mxu1 }
 0x1f1   :  { %v2619_v44 = vadd.f32 %v2618_v36, %v2617_v35 }
 0x1f2   :  { %v2620_v37 = vpop.f32.mrf.mxu1 }
 0x1f3   :  { %v2175_v49 = vadd.f32 %v2619_v44, %v2135_v47 }
 0x1f4   :  { %v2621_v20 = vpop.f32.mrf.mxu1 }
 0x215   :  { %v2639_v38 = vpop.f32.mrf.mxu0 }
 0x217   :  { %v2640_v40 = vpop.f32.mrf.mxu0 }
 0x218   :  { %v2641_v48 = vadd.f32 %v2640_v40, %v2639_v38 }
 0x219   :  { %v2642_v43 = vpop.f32.mrf.mxu0 }
 0x21a   :  { %v2215_v41 = vadd.f32 %v2641_v48, %v2175_v49 }
 0x21b   :  { %v2643_v46 = vpop.f32.mrf.mxu0 }
 0x21e   :  { %v2661_v45 = vpop.f32.mrf.mxu1 }
 0x220   :  { %v2662_v52 = vpop.f32.mrf.mxu1 }
 0x221   :  { %v2663_v53 = vadd.f32 %v2662_v52, %v2661_v45 }
 0x222   :  { %v2664_v54 = vpop.f32.mrf.mxu1 }
 0x223   :  { %v2255_v39 = vadd.f32 %v2663_v53, %v2215_v41 }
 0x224   :  { %v2665_v50 = vpop.f32.mrf.mxu1 }
 0x225   :  { %2261 = vst.msk [vmem:[%s3749_s5] sm:$0xff] %vm2260_vm4, %v2255_v39 }
 0x226   :  { %2266 = vsyncpa [#allocation4], 1 }
 0x227   :  { %2267 = vsyncpa [#allocation6], 1 }

</bundles_post_ra>
